<compile_context>
chip_gen: v7x
topology: tpu7x:2x2x1
jax: 0.10.0
libtpu: 0.0.40
codegen_flags: <defaults>
</compile_context>

<pallas_src>
import functools

import numpy as np

import jax
import jax.numpy as jnp
from jax import lax
from jax.experimental import pallas as pl
from jax.experimental.pallas import tpu as pltpu


def _round_up(x, m):
    return ((x + m - 1) // m) * m


# -----------------------------------------------------------------------------
# Fused RDB kernel: one grid step == the full RDB forward for one batch element.
# -----------------------------------------------------------------------------
def _rdb_fused_kernel(x_ref, w_ref, b_ref, wp_ref, bp_ref, mask_ref,
                      o_ref, t_ref, slab_ref, *,
                      wpad, in_ch_pad, inter, d_list, hw_al):
    """Refs:
      x_ref   : (1, in_ch_pad, hw_al) f32  zero-padded input (flattened padded NCHW)
      w_ref   : (L, inter, K_max)     f32  stacked per-layer conv weights (K zero-padded)
      b_ref   : (L, inter, 1)         f32  per-layer biases
      wp_ref  : (in_ch, c_max_pad)    f32  1x1 conv weight with residual identity folded in
      bp_ref  : (in_ch, 1)            f32  1x1 conv bias
      mask_ref: (1, hw_al)            f32  1.0 on real pixels, 0.0 on guard cells
      o_ref   : (1, in_ch, hw_al)     f32  output in the padded flattened layout
      t_ref   : (c_max_pad, hw_al)    f32  VMEM scratch: growing channel concat
      slab_ref: (K_max, hw_al)        f32  VMEM scratch: stacked 9-tap activations
    """
    # Zero the tap slab once per grid step so K columns beyond the current
    # layer's 9*cin_pad extent multiply exact zeros (never stale VMEM from the
    # previous batch element).
    slab_ref[...] = jnp.zeros_like(slab_ref)

    # Input block is already channel- and spatially-zero-padded by the wrapper.
    t_ref[0:in_ch_pad, :] = x_ref[0]

    mask = mask_ref[...]                       # (1, hw_al), hoisted once

    for i, d in enumerate(d_list):
        cin_pad = in_ch_pad + i * inter
        # Build the stacked-K slab: 9 shifted copies of the current concat
        # tensor.  Guard rows/cols turn each dilated tap into a pure lane roll
        # (no border masks, no wraparound for interior pixels).
        for dy in range(3):
            for dx in range(3):
                off = (dy - 1) * d * wpad + (dx - 1) * d
                tap = dy * 3 + dx
                t_cur = t_ref[0:cin_pad, :]
                shifted = t_cur if off == 0 else pltpu.roll(
                    t_cur, shift=(-off) % hw_al, axis=1)
                slab_ref[tap * cin_pad:(tap + 1) * cin_pad, :] = shifted
        # ONE MXU matmul with K = 9*cin_pad (zero-padded columns beyond that).
        acc = jnp.dot(w_ref[i], slab_ref[...], preferred_element_type=jnp.float32)
        # Bias + ReLU, then zero the guard cells so the next layer's rolls read
        # correct zero padding.  torch.cat([...], dim=1) stays in VMEM.
        t_ref[cin_pad:cin_pad + inter, :] = jnp.maximum(acc + b_ref[i], 0.0) * mask

    # Final 1x1 conv (+ bias); the residual `+ x` is folded into wp_ref.
    y = jnp.dot(wp_ref[...], t_ref[...], preferred_element_type=jnp.float32)
    o_ref[0] = (y + bp_ref[...]).astype(o_ref.dtype)


# -----------------------------------------------------------------------------
# Wrapper: weight permutation / packing + pallas_call
# -----------------------------------------------------------------------------
def rdb_forward(params, x, d_list, inter_num):
    """x: (N, in_ch, H, W) float32 (NCHW, same as PyTorch). Matches RDB.forward."""
    N, in_ch, H, W = x.shape
    L = len(d_list)
    assert L >= 1 and all(d >= 1 for d in d_list)
    d_max = max(d_list)
    inter = inter_num
    in_ch_pad = _round_up(in_ch, 8)
    c_max_pad = in_ch_pad + L * inter
    cin_pad_max = in_ch_pad + (L - 1) * inter
    k_max = 9 * cin_pad_max
    Hp, Wp = H + 2 * d_max, W + 2 * d_max
    hw_al = _round_up(Hp * Wp, 128)

    # Input: zero-pad channels to in_ch_pad and spatial dims with d_max guard
    # rows/cols, flatten, pad the lane tail up to a multiple of 128.
    x_p = jnp.pad(x, ((0, 0), (0, in_ch_pad - in_ch), (d_max, d_max), (d_max, d_max)))
    x_p = x_p.reshape(N, in_ch_pad, Hp * Wp)
    x_p = jnp.pad(x_p, ((0, 0), (0, 0), (0, hw_al - Hp * Wp)))

    # Dense-layer weights: permute Cin from torch order [t_{i-1},...,t_0,x] to
    # the internal order [x(+zero pad), t_0, t_1, ...], reshape to stacked-K
    # (inter, 9*cin_pad), zero-pad to K_max, stack across layers.
    w_list, b_list = [], []
    for i, (w, b) in enumerate(params["dense"]):
        cin_pad = in_ch_pad + i * inter
        pieces = [w[:, i * inter:i * inter + in_ch],
                  jnp.zeros((inter, in_ch_pad - in_ch, 3, 3), w.dtype)]
        for m in range(i):
            pieces.append(w[:, (i - 1 - m) * inter:(i - m) * inter])
        w_int = jnp.concatenate(pieces, axis=1)                    # (inter, cin_pad, 3, 3)
        w_stk = jnp.transpose(w_int, (0, 2, 3, 1)).reshape(inter, 9 * cin_pad)
        w_stk = jnp.pad(w_stk, ((0, 0), (0, k_max - 9 * cin_pad)))
        w_list.append(w_stk)
        b_list.append(b.reshape(inter, 1))
    w_dense = jnp.stack(w_list)                                    # (L, inter, K_max)
    b_dense = jnp.stack(b_list)                                    # (L, inter, 1)

    # 1x1 post conv: permute Cin, pad, and fold the residual identity into the
    # x columns (internal channel order puts x at rows 0:in_ch).
    w_post, b_post = params["post"]                                # (in_ch, c_tot, 1, 1)
    wp = w_post[:, :, 0, 0]
    pieces = [wp[:, L * inter:L * inter + in_ch] + jnp.eye(in_ch, dtype=wp.dtype),
              jnp.zeros((in_ch, in_ch_pad - in_ch), wp.dtype)]
    for m in range(L):
        pieces.append(wp[:, (L - 1 - m) * inter:(L - m) * inter])
    wp_int = jnp.concatenate(pieces, axis=1)                       # (in_ch, c_max_pad)
    bp = b_post.reshape(in_ch, 1)

    # Interior mask (1.0 on real pixels, 0.0 on guard rows/cols and lane tail),
    # precomputed once on the host and hoisted out of the layer loop.
    m2 = np.zeros((Hp, Wp), np.float32)
    m2[d_max:d_max + H, d_max:d_max + W] = 1.0
    mask = np.zeros((1, hw_al), np.float32)
    mask[0, :Hp * Wp] = m2.reshape(-1)
    mask = jnp.asarray(mask)

    flops = sum(2 * 9 * (in_ch_pad + i * inter) * inter * hw_al for i in range(L))
    flops = N * (flops + 2 * c_max_pad * in_ch * hw_al)
    bytes_accessed = 4 * (N * (in_ch_pad + in_ch) * hw_al
                          + w_dense.size + b_dense.size + wp_int.size
                          + bp.size + mask.size)

    kernel = functools.partial(
        _rdb_fused_kernel, wpad=Wp, in_ch_pad=in_ch_pad, inter=inter,
        d_list=tuple(d_list), hw_al=hw_al)

    out = pl.pallas_call(
        kernel,
        out_shape=jax.ShapeDtypeStruct((N, in_ch, hw_al), jnp.float32),
        grid=(N,),
        in_specs=[
            pl.BlockSpec((1, in_ch_pad, hw_al), lambda n: (n, 0, 0)),
            pl.BlockSpec((L, inter, k_max), lambda n: (0, 0, 0)),
            pl.BlockSpec((L, inter, 1), lambda n: (0, 0, 0)),
            pl.BlockSpec((in_ch, c_max_pad), lambda n: (0, 0)),
            pl.BlockSpec((in_ch, 1), lambda n: (0, 0)),
            pl.BlockSpec((1, hw_al), lambda n: (0, 0)),
        ],
        out_specs=pl.BlockSpec((1, in_ch, hw_al), lambda n: (n, 0, 0)),
        scratch_shapes=[
            pltpu.VMEM((c_max_pad, hw_al), jnp.float32),   # growing concat
            pltpu.VMEM((k_max, hw_al), jnp.float32),        # stacked-K tap slab
        ],
        compiler_params=pltpu.CompilerParams(dimension_semantics=("parallel",)),
        cost_estimate=pl.CostEstimate(flops=int(flops), transcendentals=0,
                                      bytes_accessed=int(bytes_accessed)),
    )(x_p, w_dense, b_dense, wp_int, bp, mask)

    # Un-pad: drop the lane tail and the guard rows/cols.
    out = out[:, :, :Hp * Wp].reshape(N, in_ch, Hp, Wp)
    return out[:, :, d_max:d_max + H, d_max:d_max + W]


# -----------------------------------------------------------------------------
# Parameter init (PyTorch OIHW layout) + pure-JAX reference for verification
# -----------------------------------------------------------------------------
def init_rdb_params(key, in_channel, d_list, inter_num):
    params = {"dense": [], "post": None}
    c = in_channel
    for _ in range(len(d_list)):
        key, kw, kb = jax.random.split(key, 3)
        w = jax.random.normal(kw, (inter_num, c, 3, 3), jnp.float32) * 0.1
        b = jax.random.normal(kb, (inter_num,), jnp.float32) * 0.1
        params["dense"].append((w, b))
        c += inter_num
    key, kw, kb = jax.random.split(key, 3)
    w_post = jax.random.normal(kw, (in_channel, c, 1, 1), jnp.float32) * 0.1
    b_post = jax.random.normal(kb, (in_channel,), jnp.float32) * 0.1
    params["post"] = (w_post, b_post)
    return params


def _ref_conv_nchw(x, w, b, dilation, padding):
    dn = lax.conv_dimension_numbers(x.shape, w.shape, ("NCHW", "OIHW", "NCHW"))
    y = lax.conv_general_dilated(
        x, w, window_strides=(1, 1),
        padding=[(padding, padding), (padding, padding)],
        rhs_dilation=(dilation, dilation), dimension_numbers=dn)
    return y + b.reshape(1, -1, 1, 1)


def rdb_forward_ref(params, x, d_list):
    t = x
    for (w, b), d in zip(params["dense"], d_list):
        _t = jnp.maximum(_ref_conv_nchw(t, w, b, d, d), 0.0)
        t = jnp.concatenate([_t, t], axis=1)           # torch.cat([_t, t], dim=1)
    w_post, b_post = params["post"]
    y = _ref_conv_nchw(t, w_post, b_post, 1, 0)
    return y + x


if __name__ == "__main__":
    # RDB(in_channel=4, d_list=(1, 2, 1), inter_num=8), NCHW input like PyTorch.
    in_channel, d_list, inter_num = 4, (1, 2, 1), 8
    N, H, W = 2, 16, 16

    key = jax.random.PRNGKey(0)
    key, kx = jax.random.split(key)
    x = jax.random.normal(kx, (N, in_channel, H, W), jnp.float32)
    params = init_rdb_params(key, in_channel, d_list, inter_num)

    fwd = jax.jit(rdb_forward, static_argnames=("d_list", "inter_num"))
    out = fwd(params, x, d_list=d_list, inter_num=inter_num)
    out = jax.block_until_ready(out)

    ref = rdb_forward_ref(params, x, d_list)
    assert out.shape == (N, in_channel, H, W)
    err = float(jnp.max(jnp.abs(out - ref)))
    assert jnp.allclose(out, ref, atol=2e-4, rtol=2e-4), f"mismatch vs reference: {err}"

    print("KERNEL_OK")
</pallas_src>

<mosaic_0001>
module attributes {stable_mosaic.version = 11 : i64} {
  func.func @_rdb_fused_kernel(%arg0: i32, %arg1: memref<1x8x512xf32, #tpu.memory_space<vmem>>, %arg2: memref<3x8x216xf32, #tpu.memory_space<vmem>>, %arg3: memref<3x8x1xf32, #tpu.memory_space<vmem>>, %arg4: memref<4x32xf32, #tpu.memory_space<vmem>>, %arg5: memref<4x1xf32, #tpu.memory_space<vmem>>, %arg6: memref<1x512xf32, #tpu.memory_space<vmem>>, %arg7: memref<1x4x512xf32, #tpu.memory_space<vmem>>, %arg8: memref<32x512xf32, #tpu.memory_space<vmem>>, %arg9: memref<216x512xf32, #tpu.memory_space<vmem>>) attributes {dimension_semantics = [#tpu.dimension_semantics<parallel>], iteration_bounds = array<i64: 2>, scalar_prefetch = 0 : i64, scratch_operands = 2 : i64, tpu.core_type = #tpu.core_type<tc>, window_params = [{transform_indices = @transform_0, window_bounds = array<i64: 1, 8, 512>}, {pipeline_mode = #tpu.pipeline_mode<synchronous>, transform_indices = @transform_1, window_bounds = array<i64: 3, 8, 216>}, {pipeline_mode = #tpu.pipeline_mode<synchronous>, transform_indices = @transform_2, window_bounds = array<i64: 3, 8, 1>}, {pipeline_mode = #tpu.pipeline_mode<synchronous>, transform_indices = @transform_3, window_bounds = array<i64: 4, 32>}, {pipeline_mode = #tpu.pipeline_mode<synchronous>, transform_indices = @transform_4, window_bounds = array<i64: 4, 1>}, {pipeline_mode = #tpu.pipeline_mode<synchronous>, transform_indices = @transform_5, window_bounds = array<i64: 1, 512>}, {transform_indices = @transform_6, window_bounds = array<i64: 1, 4, 512>}]} {
    %cst = arith.constant 0.000000e+00 : f32
    %0 = vector.broadcast %cst : f32 to vector<216x512xf32>
    %c0 = arith.constant 0 : index
    %c0_0 = arith.constant 0 : index
    %1 = vector.load %arg9[%c0, %c0_0] : memref<216x512xf32, #tpu.memory_space<vmem>>, vector<216x512xf32>
    tpu.vector_store %arg9[%c0, %c0_0], %0 {strides = array<i32>} : memref<216x512xf32, #tpu.memory_space<vmem>>, vector<216x512xf32>,
    %c0_1 = arith.constant 0 : index
    %c0_2 = arith.constant 0 : index
    %c0_3 = arith.constant 0 : index
    %2 = vector.load %arg1[%c0_1, %c0_2, %c0_3] : memref<1x8x512xf32, #tpu.memory_space<vmem>>, vector<1x8x512xf32>
    %3 = vector.shape_cast %2 : vector<1x8x512xf32> to vector<8x512xf32>
    %c0_4 = arith.constant 0 : index
    %c0_5 = arith.constant 0 : index
    %4 = vector.load %arg8[%c0_4, %c0_5] : memref<32x512xf32, #tpu.memory_space<vmem>>, vector<8x512xf32>
    tpu.vector_store %arg8[%c0_4, %c0_5], %3 {strides = array<i32>} : memref<32x512xf32, #tpu.memory_space<vmem>>, vector<8x512xf32>,
    %c0_6 = arith.constant 0 : index
    %c0_7 = arith.constant 0 : index
    %5 = vector.load %arg6[%c0_6, %c0_7] : memref<1x512xf32, #tpu.memory_space<vmem>>, vector<1x512xf32>
    %c0_8 = arith.constant 0 : index
    %c0_9 = arith.constant 0 : index
    %6 = vector.load %arg8[%c0_8, %c0_9] : memref<32x512xf32, #tpu.memory_space<vmem>>, vector<8x512xf32>
    %c21_i32 = arith.constant 21 : i32
    %7 = tpu.dynamic_rotate %6 by %c21_i32 dim 1 : vector<8x512xf32>, i32 -> vector<8x512xf32>
    %c0_10 = arith.constant 0 : index
    %c0_11 = arith.constant 0 : index
    %8 = vector.load %arg9[%c0_10, %c0_11] : memref<216x512xf32, #tpu.memory_space<vmem>>, vector<8x512xf32>
    tpu.vector_store %arg9[%c0_10, %c0_11], %7 {strides = array<i32>} : memref<216x512xf32, #tpu.memory_space<vmem>>, vector<8x512xf32>,
    %c0_12 = arith.constant 0 : index
    %c0_13 = arith.constant 0 : index
    %9 = vector.load %arg8[%c0_12, %c0_13] : memref<32x512xf32, #tpu.memory_space<vmem>>, vector<8x512xf32>
    %c20_i32 = arith.constant 20 : i32
    %10 = tpu.dynamic_rotate %9 by %c20_i32 dim 1 : vector<8x512xf32>, i32 -> vector<8x512xf32>
    %c8 = arith.constant 8 : index
    %c0_14 = arith.constant 0 : index
    %11 = vector.load %arg9[%c8, %c0_14] : memref<216x512xf32, #tpu.memory_space<vmem>>, vector<8x512xf32>
    tpu.vector_store %arg9[%c8, %c0_14], %10 {strides = array<i32>} : memref<216x512xf32, #tpu.memory_space<vmem>>, vector<8x512xf32>,
    %c0_15 = arith.constant 0 : index
    %c0_16 = arith.constant 0 : index
    %12 = vector.load %arg8[%c0_15, %c0_16] : memref<32x512xf32, #tpu.memory_space<vmem>>, vector<8x512xf32>
    %c19_i32 = arith.constant 19 : i32
    %13 = tpu.dynamic_rotate %12 by %c19_i32 dim 1 : vector<8x512xf32>, i32 -> vector<8x512xf32>
    %c16 = arith.constant 16 : index
    %c0_17 = arith.constant 0 : index
    %14 = vector.load %arg9[%c16, %c0_17] : memref<216x512xf32, #tpu.memory_space<vmem>>, vector<8x512xf32>
    tpu.vector_store %arg9[%c16, %c0_17], %13 {strides = array<i32>} : memref<216x512xf32, #tpu.memory_space<vmem>>, vector<8x512xf32>,
    %c0_18 = arith.constant 0 : index
    %c0_19 = arith.constant 0 : index
    %15 = vector.load %arg8[%c0_18, %c0_19] : memref<32x512xf32, #tpu.memory_space<vmem>>, vector<8x512xf32>
    %c1_i32 = arith.constant 1 : i32
    %16 = tpu.dynamic_rotate %15 by %c1_i32 dim 1 : vector<8x512xf32>, i32 -> vector<8x512xf32>
    %c24 = arith.constant 24 : index
    %c0_20 = arith.constant 0 : index
    %17 = vector.load %arg9[%c24, %c0_20] : memref<216x512xf32, #tpu.memory_space<vmem>>, vector<8x512xf32>
    tpu.vector_store %arg9[%c24, %c0_20], %16 {strides = array<i32>} : memref<216x512xf32, #tpu.memory_space<vmem>>, vector<8x512xf32>,
    %c0_21 = arith.constant 0 : index
    %c0_22 = arith.constant 0 : index
    %18 = vector.load %arg8[%c0_21, %c0_22] : memref<32x512xf32, #tpu.memory_space<vmem>>, vector<8x512xf32>
    %c32 = arith.constant 32 : index
    %c0_23 = arith.constant 0 : index
    %19 = vector.load %arg9[%c32, %c0_23] : memref<216x512xf32, #tpu.memory_space<vmem>>, vector<8x512xf32>
    tpu.vector_store %arg9[%c32, %c0_23], %18 {strides = array<i32>} : memref<216x512xf32, #tpu.memory_space<vmem>>, vector<8x512xf32>,
    %c0_24 = arith.constant 0 : index
    %c0_25 = arith.constant 0 : index
    %20 = vector.load %arg8[%c0_24, %c0_25] : memref<32x512xf32, #tpu.memory_space<vmem>>, vector<8x512xf32>
    %c511_i32 = arith.constant 511 : i32
    %21 = tpu.dynamic_rotate %20 by %c511_i32 dim 1 : vector<8x512xf32>, i32 -> vector<8x512xf32>
    %c40 = arith.constant 40 : index
    %c0_26 = arith.constant 0 : index
    %22 = vector.load %arg9[%c40, %c0_26] : memref<216x512xf32, #tpu.memory_space<vmem>>, vector<8x512xf32>
    tpu.vector_store %arg9[%c40, %c0_26], %21 {strides = array<i32>} : memref<216x512xf32, #tpu.memory_space<vmem>>, vector<8x512xf32>,
    %c0_27 = arith.constant 0 : index
    %c0_28 = arith.constant 0 : index
    %23 = vector.load %arg8[%c0_27, %c0_28] : memref<32x512xf32, #tpu.memory_space<vmem>>, vector<8x512xf32>
    %c493_i32 = arith.constant 493 : i32
    %24 = tpu.dynamic_rotate %23 by %c493_i32 dim 1 : vector<8x512xf32>, i32 -> vector<8x512xf32>
    %c48 = arith.constant 48 : index
    %c0_29 = arith.constant 0 : index
    %25 = vector.load %arg9[%c48, %c0_29] : memref<216x512xf32, #tpu.memory_space<vmem>>, vector<8x512xf32>
    tpu.vector_store %arg9[%c48, %c0_29], %24 {strides = array<i32>} : memref<216x512xf32, #tpu.memory_space<vmem>>, vector<8x512xf32>,
    %c0_30 = arith.constant 0 : index
    %c0_31 = arith.constant 0 : index
    %26 = vector.load %arg8[%c0_30, %c0_31] : memref<32x512xf32, #tpu.memory_space<vmem>>, vector<8x512xf32>
    %c492_i32 = arith.constant 492 : i32
    %27 = tpu.dynamic_rotate %26 by %c492_i32 dim 1 : vector<8x512xf32>, i32 -> vector<8x512xf32>
    %c56 = arith.constant 56 : index
    %c0_32 = arith.constant 0 : index
    %28 = vector.load %arg9[%c56, %c0_32] : memref<216x512xf32, #tpu.memory_space<vmem>>, vector<8x512xf32>
    tpu.vector_store %arg9[%c56, %c0_32], %27 {strides = array<i32>} : memref<216x512xf32, #tpu.memory_space<vmem>>, vector<8x512xf32>,
    %c0_33 = arith.constant 0 : index
    %c0_34 = arith.constant 0 : index
    %29 = vector.load %arg8[%c0_33, %c0_34] : memref<32x512xf32, #tpu.memory_space<vmem>>, vector<8x512xf32>
    %c491_i32 = arith.constant 491 : i32
    %30 = tpu.dynamic_rotate %29 by %c491_i32 dim 1 : vector<8x512xf32>, i32 -> vector<8x512xf32>
    %c64 = arith.constant 64 : index
    %c0_35 = arith.constant 0 : index
    %31 = vector.load %arg9[%c64, %c0_35] : memref<216x512xf32, #tpu.memory_space<vmem>>, vector<8x512xf32>
    tpu.vector_store %arg9[%c64, %c0_35], %30 {strides = array<i32>} : memref<216x512xf32, #tpu.memory_space<vmem>>, vector<8x512xf32>,
    %c0_36 = arith.constant 0 : index
    %c0_37 = arith.constant 0 : index
    %c0_38 = arith.constant 0 : index
    %32 = vector.load %arg2[%c0_36, %c0_37, %c0_38] : memref<3x8x216xf32, #tpu.memory_space<vmem>>, vector<1x8x216xf32>
    %33 = vector.shape_cast %32 : vector<1x8x216xf32> to vector<8x216xf32>
    %c0_39 = arith.constant 0 : index
    %c0_40 = arith.constant 0 : index
    %34 = vector.load %arg9[%c0_39, %c0_40] : memref<216x512xf32, #tpu.memory_space<vmem>>, vector<216x512xf32>
    %cst_41 = arith.constant dense<0.000000e+00> : vector<8x512xf32>
    %35 = tpu.matmul %33, %34, %cst_41 {dimension_numbers = #tpu.dot_dimension_numbers<[1], [0], [0], [1], [0, 0, 1, 1], [], []>} : vector<8x216xf32>, vector<216x512xf32>, vector<8x512xf32> -> vector<8x512xf32>
    %c0_42 = arith.constant 0 : index
    %c0_43 = arith.constant 0 : index
    %c0_44 = arith.constant 0 : index
    %36 = vector.load %arg3[%c0_42, %c0_43, %c0_44] : memref<3x8x1xf32, #tpu.memory_space<vmem>>, vector<1x8x1xf32>
    %37 = vector.shape_cast %36 : vector<1x8x1xf32> to vector<8x1xf32>
    %38 = vector.broadcast %37 : vector<8x1xf32> to vector<8x512xf32>
    %39 = arith.addf %35, %38 : vector<8x512xf32>
    %cst_45 = arith.constant 0.000000e+00 : f32
    %40 = vector.broadcast %cst_45 : f32 to vector<8x512xf32>
    %41 = arith.maximumf %39, %40 : vector<8x512xf32>
    %42 = vector.broadcast %5 : vector<1x512xf32> to vector<8x512xf32>
    %43 = arith.mulf %41, %42 : vector<8x512xf32>
    %c8_46 = arith.constant 8 : index
    %c0_47 = arith.constant 0 : index
    %44 = vector.load %arg8[%c8_46, %c0_47] : memref<32x512xf32, #tpu.memory_space<vmem>>, vector<8x512xf32>
    tpu.vector_store %arg8[%c8_46, %c0_47], %43 {strides = array<i32>} : memref<32x512xf32, #tpu.memory_space<vmem>>, vector<8x512xf32>,
    %c0_48 = arith.constant 0 : index
    %c0_49 = arith.constant 0 : index
    %45 = vector.load %arg8[%c0_48, %c0_49] : memref<32x512xf32, #tpu.memory_space<vmem>>, vector<16x512xf32>
    %c42_i32 = arith.constant 42 : i32
    %46 = tpu.dynamic_rotate %45 by %c42_i32 dim 1 : vector<16x512xf32>, i32 -> vector<16x512xf32>
    %c0_50 = arith.constant 0 : index
    %c0_51 = arith.constant 0 : index
    %47 = vector.load %arg9[%c0_50, %c0_51] : memref<216x512xf32, #tpu.memory_space<vmem>>, vector<16x512xf32>
    tpu.vector_store %arg9[%c0_50, %c0_51], %46 {strides = array<i32>} : memref<216x512xf32, #tpu.memory_space<vmem>>, vector<16x512xf32>,
    %c0_52 = arith.constant 0 : index
    %c0_53 = arith.constant 0 : index
    %48 = vector.load %arg8[%c0_52, %c0_53] : memref<32x512xf32, #tpu.memory_space<vmem>>, vector<16x512xf32>
    %c40_i32 = arith.constant 40 : i32
    %49 = tpu.dynamic_rotate %48 by %c40_i32 dim 1 : vector<16x512xf32>, i32 -> vector<16x512xf32>
    %c16_54 = arith.constant 16 : index
    %c0_55 = arith.constant 0 : index
    %50 = vector.load %arg9[%c16_54, %c0_55] : memref<216x512xf32, #tpu.memory_space<vmem>>, vector<16x512xf32>
    tpu.vector_store %arg9[%c16_54, %c0_55], %49 {strides = array<i32>} : memref<216x512xf32, #tpu.memory_space<vmem>>, vector<16x512xf32>,
    %c0_56 = arith.constant 0 : index
    %c0_57 = arith.constant 0 : index
    %51 = vector.load %arg8[%c0_56, %c0_57] : memref<32x512xf32, #tpu.memory_space<vmem>>, vector<16x512xf32>
    %c38_i32 = arith.constant 38 : i32
    %52 = tpu.dynamic_rotate %51 by %c38_i32 dim 1 : vector<16x512xf32>, i32 -> vector<16x512xf32>
    %c32_58 = arith.constant 32 : index
    %c0_59 = arith.constant 0 : index
    %53 = vector.load %arg9[%c32_58, %c0_59] : memref<216x512xf32, #tpu.memory_space<vmem>>, vector<16x512xf32>
    tpu.vector_store %arg9[%c32_58, %c0_59], %52 {strides = array<i32>} : memref<216x512xf32, #tpu.memory_space<vmem>>, vector<16x512xf32>,
    %c0_60 = arith.constant 0 : index
    %c0_61 = arith.constant 0 : index
    %54 = vector.load %arg8[%c0_60, %c0_61] : memref<32x512xf32, #tpu.memory_space<vmem>>, vector<16x512xf32>
    %c2_i32 = arith.constant 2 : i32
    %55 = tpu.dynamic_rotate %54 by %c2_i32 dim 1 : vector<16x512xf32>, i32 -> vector<16x512xf32>
    %c48_62 = arith.constant 48 : index
    %c0_63 = arith.constant 0 : index
    %56 = vector.load %arg9[%c48_62, %c0_63] : memref<216x512xf32, #tpu.memory_space<vmem>>, vector<16x512xf32>
    tpu.vector_store %arg9[%c48_62, %c0_63], %55 {strides = array<i32>} : memref<216x512xf32, #tpu.memory_space<vmem>>, vector<16x512xf32>,
    %c0_64 = arith.constant 0 : index
    %c0_65 = arith.constant 0 : index
    %57 = vector.load %arg8[%c0_64, %c0_65] : memref<32x512xf32, #tpu.memory_space<vmem>>, vector<16x512xf32>
    %c64_66 = arith.constant 64 : index
    %c0_67 = arith.constant 0 : index
    %58 = vector.load %arg9[%c64_66, %c0_67] : memref<216x512xf32, #tpu.memory_space<vmem>>, vector<16x512xf32>
    tpu.vector_store %arg9[%c64_66, %c0_67], %57 {strides = array<i32>} : memref<216x512xf32, #tpu.memory_space<vmem>>, vector<16x512xf32>,
    %c0_68 = arith.constant 0 : index
    %c0_69 = arith.constant 0 : index
    %59 = vector.load %arg8[%c0_68, %c0_69] : memref<32x512xf32, #tpu.memory_space<vmem>>, vector<16x512xf32>
    %c510_i32 = arith.constant 510 : i32
    %60 = tpu.dynamic_rotate %59 by %c510_i32 dim 1 : vector<16x512xf32>, i32 -> vector<16x512xf32>
    %c80 = arith.constant 80 : index
    %c0_70 = arith.constant 0 : index
    %61 = vector.load %arg9[%c80, %c0_70] : memref<216x512xf32, #tpu.memory_space<vmem>>, vector<16x512xf32>
    tpu.vector_store %arg9[%c80, %c0_70], %60 {strides = array<i32>} : memref<216x512xf32, #tpu.memory_space<vmem>>, vector<16x512xf32>,
    %c0_71 = arith.constant 0 : index
    %c0_72 = arith.constant 0 : index
    %62 = vector.load %arg8[%c0_71, %c0_72] : memref<32x512xf32, #tpu.memory_space<vmem>>, vector<16x512xf32>
    %c474_i32 = arith.constant 474 : i32
    %63 = tpu.dynamic_rotate %62 by %c474_i32 dim 1 : vector<16x512xf32>, i32 -> vector<16x512xf32>
    %c96 = arith.constant 96 : index
    %c0_73 = arith.constant 0 : index
    %64 = vector.load %arg9[%c96, %c0_73] : memref<216x512xf32, #tpu.memory_space<vmem>>, vector<16x512xf32>
    tpu.vector_store %arg9[%c96, %c0_73], %63 {strides = array<i32>} : memref<216x512xf32, #tpu.memory_space<vmem>>, vector<16x512xf32>,
    %c0_74 = arith.constant 0 : index
    %c0_75 = arith.constant 0 : index
    %65 = vector.load %arg8[%c0_74, %c0_75] : memref<32x512xf32, #tpu.memory_space<vmem>>, vector<16x512xf32>
    %c472_i32 = arith.constant 472 : i32
    %66 = tpu.dynamic_rotate %65 by %c472_i32 dim 1 : vector<16x512xf32>, i32 -> vector<16x512xf32>
    %c112 = arith.constant 112 : index
    %c0_76 = arith.constant 0 : index
    %67 = vector.load %arg9[%c112, %c0_76] : memref<216x512xf32, #tpu.memory_space<vmem>>, vector<16x512xf32>
    tpu.vector_store %arg9[%c112, %c0_76], %66 {strides = array<i32>} : memref<216x512xf32, #tpu.memory_space<vmem>>, vector<16x512xf32>,
    %c0_77 = arith.constant 0 : index
    %c0_78 = arith.constant 0 : index
    %68 = vector.load %arg8[%c0_77, %c0_78] : memref<32x512xf32, #tpu.memory_space<vmem>>, vector<16x512xf32>
    %c470_i32 = arith.constant 470 : i32
    %69 = tpu.dynamic_rotate %68 by %c470_i32 dim 1 : vector<16x512xf32>, i32 -> vector<16x512xf32>
    %c128 = arith.constant 128 : index
    %c0_79 = arith.constant 0 : index
    %70 = vector.load %arg9[%c128, %c0_79] : memref<216x512xf32, #tpu.memory_space<vmem>>, vector<16x512xf32>
    tpu.vector_store %arg9[%c128, %c0_79], %69 {strides = array<i32>} : memref<216x512xf32, #tpu.memory_space<vmem>>, vector<16x512xf32>,
    %c1 = arith.constant 1 : index
    %c0_80 = arith.constant 0 : index
    %c0_81 = arith.constant 0 : index
    %71 = vector.load %arg2[%c1, %c0_80, %c0_81] : memref<3x8x216xf32, #tpu.memory_space<vmem>>, vector<1x8x216xf32>
    %72 = vector.shape_cast %71 : vector<1x8x216xf32> to vector<8x216xf32>
    %c0_82 = arith.constant 0 : index
    %c0_83 = arith.constant 0 : index
    %73 = vector.load %arg9[%c0_82, %c0_83] : memref<216x512xf32, #tpu.memory_space<vmem>>, vector<216x512xf32>
    %cst_84 = arith.constant dense<0.000000e+00> : vector<8x512xf32>
    %74 = tpu.matmul %72, %73, %cst_84 {dimension_numbers = #tpu.dot_dimension_numbers<[1], [0], [0], [1], [0, 0, 1, 1], [], []>} : vector<8x216xf32>, vector<216x512xf32>, vector<8x512xf32> -> vector<8x512xf32>
    %c1_85 = arith.constant 1 : index
    %c0_86 = arith.constant 0 : index
    %c0_87 = arith.constant 0 : index
    %75 = vector.load %arg3[%c1_85, %c0_86, %c0_87] : memref<3x8x1xf32, #tpu.memory_space<vmem>>, vector<1x8x1xf32>
    %76 = vector.shape_cast %75 : vector<1x8x1xf32> to vector<8x1xf32>
    %77 = vector.broadcast %76 : vector<8x1xf32> to vector<8x512xf32>
    %78 = arith.addf %74, %77 : vector<8x512xf32>
    %cst_88 = arith.constant 0.000000e+00 : f32
    %79 = vector.broadcast %cst_88 : f32 to vector<8x512xf32>
    %80 = arith.maximumf %78, %79 : vector<8x512xf32>
    %81 = vector.broadcast %5 : vector<1x512xf32> to vector<8x512xf32>
    %82 = arith.mulf %80, %81 : vector<8x512xf32>
    %c16_89 = arith.constant 16 : index
    %c0_90 = arith.constant 0 : index
    %83 = vector.load %arg8[%c16_89, %c0_90] : memref<32x512xf32, #tpu.memory_space<vmem>>, vector<8x512xf32>
    tpu.vector_store %arg8[%c16_89, %c0_90], %82 {strides = array<i32>} : memref<32x512xf32, #tpu.memory_space<vmem>>, vector<8x512xf32>,
    %c0_91 = arith.constant 0 : index
    %c0_92 = arith.constant 0 : index
    %84 = vector.load %arg8[%c0_91, %c0_92] : memref<32x512xf32, #tpu.memory_space<vmem>>, vector<24x512xf32>
    %c21_i32_93 = arith.constant 21 : i32
    %85 = tpu.dynamic_rotate %84 by %c21_i32_93 dim 1 : vector<24x512xf32>, i32 -> vector<24x512xf32>
    %c0_94 = arith.constant 0 : index
    %c0_95 = arith.constant 0 : index
    %86 = vector.load %arg9[%c0_94, %c0_95] : memref<216x512xf32, #tpu.memory_space<vmem>>, vector<24x512xf32>
    tpu.vector_store %arg9[%c0_94, %c0_95], %85 {strides = array<i32>} : memref<216x512xf32, #tpu.memory_space<vmem>>, vector<24x512xf32>,
    %c0_96 = arith.constant 0 : index
    %c0_97 = arith.constant 0 : index
    %87 = vector.load %arg8[%c0_96, %c0_97] : memref<32x512xf32, #tpu.memory_space<vmem>>, vector<24x512xf32>
    %c20_i32_98 = arith.constant 20 : i32
    %88 = tpu.dynamic_rotate %87 by %c20_i32_98 dim 1 : vector<24x512xf32>, i32 -> vector<24x512xf32>
    %c24_99 = arith.constant 24 : index
    %c0_100 = arith.constant 0 : index
    %89 = vector.load %arg9[%c24_99, %c0_100] : memref<216x512xf32, #tpu.memory_space<vmem>>, vector<24x512xf32>
    tpu.vector_store %arg9[%c24_99, %c0_100], %88 {strides = array<i32>} : memref<216x512xf32, #tpu.memory_space<vmem>>, vector<24x512xf32>,
    %c0_101 = arith.constant 0 : index
    %c0_102 = arith.constant 0 : index
    %90 = vector.load %arg8[%c0_101, %c0_102] : memref<32x512xf32, #tpu.memory_space<vmem>>, vector<24x512xf32>
    %c19_i32_103 = arith.constant 19 : i32
    %91 = tpu.dynamic_rotate %90 by %c19_i32_103 dim 1 : vector<24x512xf32>, i32 -> vector<24x512xf32>
    %c48_104 = arith.constant 48 : index
    %c0_105 = arith.constant 0 : index
    %92 = vector.load %arg9[%c48_104, %c0_105] : memref<216x512xf32, #tpu.memory_space<vmem>>, vector<24x512xf32>
    tpu.vector_store %arg9[%c48_104, %c0_105], %91 {strides = array<i32>} : memref<216x512xf32, #tpu.memory_space<vmem>>, vector<24x512xf32>,
    %c0_106 = arith.constant 0 : index
    %c0_107 = arith.constant 0 : index
    %93 = vector.load %arg8[%c0_106, %c0_107] : memref<32x512xf32, #tpu.memory_space<vmem>>, vector<24x512xf32>
    %c1_i32_108 = arith.constant 1 : i32
    %94 = tpu.dynamic_rotate %93 by %c1_i32_108 dim 1 : vector<24x512xf32>, i32 -> vector<24x512xf32>
    %c72 = arith.constant 72 : index
    %c0_109 = arith.constant 0 : index
    %95 = vector.load %arg9[%c72, %c0_109] : memref<216x512xf32, #tpu.memory_space<vmem>>, vector<24x512xf32>
    tpu.vector_store %arg9[%c72, %c0_109], %94 {strides = array<i32>} : memref<216x512xf32, #tpu.memory_space<vmem>>, vector<24x512xf32>,
    %c0_110 = arith.constant 0 : index
    %c0_111 = arith.constant 0 : index
    %96 = vector.load %arg8[%c0_110, %c0_111] : memref<32x512xf32, #tpu.memory_space<vmem>>, vector<24x512xf32>
    %c96_112 = arith.constant 96 : index
    %c0_113 = arith.constant 0 : index
    %97 = vector.load %arg9[%c96_112, %c0_113] : memref<216x512xf32, #tpu.memory_space<vmem>>, vector<24x512xf32>
    tpu.vector_store %arg9[%c96_112, %c0_113], %96 {strides = array<i32>} : memref<216x512xf32, #tpu.memory_space<vmem>>, vector<24x512xf32>,
    %c0_114 = arith.constant 0 : index
    %c0_115 = arith.constant 0 : index
    %98 = vector.load %arg8[%c0_114, %c0_115] : memref<32x512xf32, #tpu.memory_space<vmem>>, vector<24x512xf32>
    %c511_i32_116 = arith.constant 511 : i32
    %99 = tpu.dynamic_rotate %98 by %c511_i32_116 dim 1 : vector<24x512xf32>, i32 -> vector<24x512xf32>
    %c120 = arith.constant 120 : index
    %c0_117 = arith.constant 0 : index
    %100 = vector.load %arg9[%c120, %c0_117] : memref<216x512xf32, #tpu.memory_space<vmem>>, vector<24x512xf32>
    tpu.vector_store %arg9[%c120, %c0_117], %99 {strides = array<i32>} : memref<216x512xf32, #tpu.memory_space<vmem>>, vector<24x512xf32>,
    %c0_118 = arith.constant 0 : index
    %c0_119 = arith.constant 0 : index
    %101 = vector.load %arg8[%c0_118, %c0_119] : memref<32x512xf32, #tpu.memory_space<vmem>>, vector<24x512xf32>
    %c493_i32_120 = arith.constant 493 : i32
    %102 = tpu.dynamic_rotate %101 by %c493_i32_120 dim 1 : vector<24x512xf32>, i32 -> vector<24x512xf32>
    %c144 = arith.constant 144 : index
    %c0_121 = arith.constant 0 : index
    %103 = vector.load %arg9[%c144, %c0_121] : memref<216x512xf32, #tpu.memory_space<vmem>>, vector<24x512xf32>
    tpu.vector_store %arg9[%c144, %c0_121], %102 {strides = array<i32>} : memref<216x512xf32, #tpu.memory_space<vmem>>, vector<24x512xf32>,
    %c0_122 = arith.constant 0 : index
    %c0_123 = arith.constant 0 : index
    %104 = vector.load %arg8[%c0_122, %c0_123] : memref<32x512xf32, #tpu.memory_space<vmem>>, vector<24x512xf32>
    %c492_i32_124 = arith.constant 492 : i32
    %105 = tpu.dynamic_rotate %104 by %c492_i32_124 dim 1 : vector<24x512xf32>, i32 -> vector<24x512xf32>
    %c168 = arith.constant 168 : index
    %c0_125 = arith.constant 0 : index
    %106 = vector.load %arg9[%c168, %c0_125] : memref<216x512xf32, #tpu.memory_space<vmem>>, vector<24x512xf32>
    tpu.vector_store %arg9[%c168, %c0_125], %105 {strides = array<i32>} : memref<216x512xf32, #tpu.memory_space<vmem>>, vector<24x512xf32>,
    %c0_126 = arith.constant 0 : index
    %c0_127 = arith.constant 0 : index
    %107 = vector.load %arg8[%c0_126, %c0_127] : memref<32x512xf32, #tpu.memory_space<vmem>>, vector<24x512xf32>
    %c491_i32_128 = arith.constant 491 : i32
    %108 = tpu.dynamic_rotate %107 by %c491_i32_128 dim 1 : vector<24x512xf32>, i32 -> vector<24x512xf32>
    %c192 = arith.constant 192 : index
    %c0_129 = arith.constant 0 : index
    %109 = vector.load %arg9[%c192, %c0_129] : memref<216x512xf32, #tpu.memory_space<vmem>>, vector<24x512xf32>
    tpu.vector_store %arg9[%c192, %c0_129], %108 {strides = array<i32>} : memref<216x512xf32, #tpu.memory_space<vmem>>, vector<24x512xf32>,
    %c2 = arith.constant 2 : index
    %c0_130 = arith.constant 0 : index
    %c0_131 = arith.constant 0 : index
    %110 = vector.load %arg2[%c2, %c0_130, %c0_131] : memref<3x8x216xf32, #tpu.memory_space<vmem>>, vector<1x8x216xf32>
    %111 = vector.shape_cast %110 : vector<1x8x216xf32> to vector<8x216xf32>
    %c0_132 = arith.constant 0 : index
    %c0_133 = arith.constant 0 : index
    %112 = vector.load %arg9[%c0_132, %c0_133] : memref<216x512xf32, #tpu.memory_space<vmem>>, vector<216x512xf32>
    %cst_134 = arith.constant dense<0.000000e+00> : vector<8x512xf32>
    %113 = tpu.matmul %111, %112, %cst_134 {dimension_numbers = #tpu.dot_dimension_numbers<[1], [0], [0], [1], [0, 0, 1, 1], [], []>} : vector<8x216xf32>, vector<216x512xf32>, vector<8x512xf32> -> vector<8x512xf32>
    %c2_135 = arith.constant 2 : index
    %c0_136 = arith.constant 0 : index
    %c0_137 = arith.constant 0 : index
    %114 = vector.load %arg3[%c2_135, %c0_136, %c0_137] : memref<3x8x1xf32, #tpu.memory_space<vmem>>, vector<1x8x1xf32>
    %115 = vector.shape_cast %114 : vector<1x8x1xf32> to vector<8x1xf32>
    %116 = vector.broadcast %115 : vector<8x1xf32> to vector<8x512xf32>
    %117 = arith.addf %113, %116 : vector<8x512xf32>
    %cst_138 = arith.constant 0.000000e+00 : f32
    %118 = vector.broadcast %cst_138 : f32 to vector<8x512xf32>
    %119 = arith.maximumf %117, %118 : vector<8x512xf32>
    %120 = vector.broadcast %5 : vector<1x512xf32> to vector<8x512xf32>
    %121 = arith.mulf %119, %120 : vector<8x512xf32>
    %c24_139 = arith.constant 24 : index
    %c0_140 = arith.constant 0 : index
    %122 = vector.load %arg8[%c24_139, %c0_140] : memref<32x512xf32, #tpu.memory_space<vmem>>, vector<8x512xf32>
    tpu.vector_store %arg8[%c24_139, %c0_140], %121 {strides = array<i32>} : memref<32x512xf32, #tpu.memory_space<vmem>>, vector<8x512xf32>,
    %c0_141 = arith.constant 0 : index
    %c0_142 = arith.constant 0 : index
    %123 = vector.load %arg4[%c0_141, %c0_142] : memref<4x32xf32, #tpu.memory_space<vmem>>, vector<4x32xf32>
    %c0_143 = arith.constant 0 : index
    %c0_144 = arith.constant 0 : index
    %124 = vector.load %arg8[%c0_143, %c0_144] : memref<32x512xf32, #tpu.memory_space<vmem>>, vector<32x512xf32>
    %cst_145 = arith.constant dense<0.000000e+00> : vector<4x512xf32>
    %125 = tpu.matmul %123, %124, %cst_145 {dimension_numbers = #tpu.dot_dimension_numbers<[1], [0], [0], [1], [0, 0, 1, 1], [], []>} : vector<4x32xf32>, vector<32x512xf32>, vector<4x512xf32> -> vector<4x512xf32>
    %c0_146 = arith.constant 0 : index
    %c0_147 = arith.constant 0 : index
    %126 = vector.load %arg5[%c0_146, %c0_147] : memref<4x1xf32, #tpu.memory_space<vmem>>, vector<4x1xf32>
    %127 = vector.broadcast %126 : vector<4x1xf32> to vector<4x512xf32>
    %128 = arith.addf %125, %127 : vector<4x512xf32>
    %c0_148 = arith.constant 0 : index
    %c0_149 = arith.constant 0 : index
    %c0_150 = arith.constant 0 : index
    %129 = vector.load %arg7[%c0_148, %c0_149, %c0_150] : memref<1x4x512xf32, #tpu.memory_space<vmem>>, vector<1x4x512xf32>
    %130 = vector.shape_cast %129 : vector<1x4x512xf32> to vector<4x512xf32>
    %131 = vector.shape_cast %128 : vector<4x512xf32> to vector<1x4x512xf32>
    tpu.vector_store %arg7[%c0_148, %c0_149, %c0_150], %131 {strides = array<i32>} : memref<1x4x512xf32, #tpu.memory_space<vmem>>, vector<1x4x512xf32>,
    return
  }
  func.func @transform_0(%arg0: i32) -> (i32, i32, i32) {
    %c0_i32 = arith.constant 0 : i32
    %c0_i32_0 = arith.constant 0 : i32
    %c0_i32_1 = arith.constant 0 : i32
    return %arg0, %c0_i32, %c0_i32_0 : i32, i32, i32
  }
  func.func @transform_1(%arg0: i32) -> (i32, i32, i32) {
    %c0_i32 = arith.constant 0 : i32
    %c0_i32_0 = arith.constant 0 : i32
    %c0_i32_1 = arith.constant 0 : i32
    %c0_i32_2 = arith.constant 0 : i32
    return %c0_i32, %c0_i32_0, %c0_i32_1 : i32, i32, i32
  }
  func.func @transform_2(%arg0: i32) -> (i32, i32, i32) {
    %c0_i32 = arith.constant 0 : i32
    %c0_i32_0 = arith.constant 0 : i32
    %c0_i32_1 = arith.constant 0 : i32
    %c0_i32_2 = arith.constant 0 : i32
    return %c0_i32, %c0_i32_0, %c0_i32_1 : i32, i32, i32
  }
  func.func @transform_3(%arg0: i32) -> (i32, i32) {
    %c0_i32 = arith.constant 0 : i32
    %c0_i32_0 = arith.constant 0 : i32
    %c0_i32_1 = arith.constant 0 : i32
    return %c0_i32, %c0_i32_0 : i32, i32
  }
  func.func @transform_4(%arg0: i32) -> (i32, i32) {
    %c0_i32 = arith.constant 0 : i32
    %c0_i32_0 = arith.constant 0 : i32
    %c0_i32_1 = arith.constant 0 : i32
    return %c0_i32, %c0_i32_0 : i32, i32
  }
  func.func @transform_5(%arg0: i32) -> (i32, i32) {
    %c0_i32 = arith.constant 0 : i32
    %c0_i32_0 = arith.constant 0 : i32
    %c0_i32_1 = arith.constant 0 : i32
    return %c0_i32, %c0_i32_0 : i32, i32
  }
  func.func @transform_6(%arg0: i32) -> (i32, i32, i32) {
    %c0_i32 = arith.constant 0 : i32
    %c0_i32_0 = arith.constant 0 : i32
    %c0_i32_1 = arith.constant 0 : i32
    return %arg0, %c0_i32, %c0_i32_0 : i32, i32, i32
  }
}

</mosaic_0001>

<bundles_post_ra>
// kernel: rdb_forward.1
= control target key start
LH: loop header
LB: loop body
LE: loop exit
PB: predicated region body
PF: predicated region fallthrough
CT: control target
= control target key end

     0   :  { %s3278_s21 = smov 0   ;;  %s4085_s0 = inlined_call_operand.vmem [shape: f32[2,8,512], index: 0, kind: input, shape index: {}]   ;;  %s4086_s1 = inlined_call_operand.vmem [shape: f32[3,8,216], index: 1, kind: input, shape index: {}]   ;;  %s4087_s2 = inlined_call_operand.vmem [shape: f32[3,8,1], index: 2, kind: input, shape index: {}]   ;;  %s4088_s3 = inlined_call_operand.vmem [shape: f32[4,32], index: 3, kind: input, shape index: {}]   ;;  %s4089_s4 = inlined_call_operand.vmem [shape: f32[4,1], index: 4, kind: input, shape index: {}]   ;;  %s4090_s5 = inlined_call_operand.vmem [shape: f32[1,512], index: 5, kind: input, shape index: {}]   ;;  %s4091_s6 = inlined_call_operand.vmem [shape: f32[2,4,512], index: 6, kind: output, shape index: {}]  }
   0x1 LB: > { %s2474_s22 = sadd.s32 4294967295, %s3223_s21   ;;  %p2478_p0 = scmp.ge.s32.totalorder %s3223_s21, 1  ;;  %s3223_s21 = sphi %s3278_s21, %s16_s21  }
   0x2   : > { %p212_p1 = scmp.lt.s32.totalorder %s3223_s21, 3 }
   0x4   : > { %p213_p2 = pnand %p2478_p0, %p212_p1 }
   0x5   : > { %p242_p3 = scmp.lt.s32.totalorder (!%p213_p2), %s2474_s22, 1  ;;  %s3225_s27 = smov (!%p213_p2), 20   ;;  %v548_v6 = vld [vmem:[%s4086_s1 + $0x8] sm:$0xff] (!%p213_p2)  ;;  %vm663_vm0 = vcmask (!%p213_p2), 719872   ;;  %v3231_v7 = vmov (!%p213_p2), 0   ;;  %v657_v8 = vld [vmem:[%s4087_s2] sm:$0xff] (!%p213_p2)  ;;  %v381_v9 = vlaneseq (!%p213_p2) }
   0x6   : > { %216 = sbr.rel (%p213_p2) target bundleno = 1428 (0x594), region = 44  ;;  %s3226_s28 = smov (!%p213_p2), 21   ;;  %2483 = vmatprep.mubr.msk.f32.mxu0 (!%p213_p2), %vm663_vm0, %v548_v6  ;;  %2484 = vmatprep.mubr.msk.f32.mxu1 (!%p213_p2), %vm663_vm0, %v548_v6 }
   0x7   : > { %s3227_s29 = smov (!%p213_p2), 19   ;;  %s3228_s30 = smov (!%p213_p2), 1   ;;  %2821 = vset.pattern.permute.xlu0 (!%p213_p2), %v3231_v7  ;;  %3212 = vset.pattern.permute.xlu1 (!%p213_p2), %v3231_v7  ;;  %v3359_v10 = vand.u32 (!%p213_p2), 127, %v381_v9 }
   0x8   : > { %s3229_s7 = smov (!%p213_p2), 127   ;;  %s3230_s8 = smov (!%p213_p2), 109  }
   0x9   : > { %s3232_s11 = smov (!%p213_p2), 108   ;;  %s3233_s12 = smov (!%p213_p2), 107   ;;  %vm383_vm1 = vcmp.lt.s32.totalorder (!%p213_p2), %v3359_v10, 21  ;;  %vm404_vm2 = vcmp.lt.s32.totalorder (!%p213_p2), %v3359_v10, 20  ;;  %vm425_vm3 = vcmp.lt.s32.totalorder (!%p213_p2), %v3359_v10, 19  ;;  %vm446_vm4 = vcmp.lt.s32.totalorder (!%p213_p2), %v3359_v10, 1 }
   0xa   : > { %vm475_vm5 = vcmp.lt.s32.totalorder (!%p213_p2), %v3359_v10, 127  ;;  %vm496_vm6 = vcmp.lt.s32.totalorder (!%p213_p2), %v3359_v10, 109  ;;  %vm517_vm7 = vcmp.lt.s32.totalorder (!%p213_p2), %v3359_v10, 108  ;;  %vm538_vm8 = vcmp.lt.s32.totalorder (!%p213_p2), %v3359_v10, 107  ;;  %s3234_s19 = smov (!%p213_p2), 42   ;;  %s3235_s20 = smov (!%p213_p2), 40  }
   0xb   : > { %s3237_s24 = smov (!%p213_p2), 2   ;;  %s3238_s25 = smov (!%p213_p2), 126   ;;  %vm866_vm9 = vcmp.lt.s32.totalorder (!%p213_p2), %v3359_v10, 42  ;;  %vm907_vm10 = vcmp.lt.s32.totalorder (!%p213_p2), %v3359_v10, 40  ;;  %vm948_vm11 = vcmp.lt.s32.totalorder (!%p213_p2), %v3359_v10, 38  ;;  %vm989_vm12 = vcmp.lt.s32.totalorder (!%p213_p2), %v3359_v10, 2 }
   0xc   : > { %s3239_s9 = smov (!%p213_p2), 90   ;;  %s3240_s10 = smov (!%p213_p2), 88   ;;  %vm1046_vm13 = vcmp.lt.s32.totalorder (!%p213_p2), %v3359_v10, 126  ;;  %vm1087_vm14 = vcmp.lt.s32.totalorder (!%p213_p2), %v3359_v10, 90  ;;  %vm1128_vm15 = vcmp.lt.s32.totalorder (!%p213_p2), %v3359_v10, 88 }
   0xd   : > { %s4093_s22 = smov (!%p242_p3, %s2474_s22), 1  ;;  %s3241_s13 = smov 86  }
   0xe   : > { %s2499_s23 = sshll.u32 %s4093_s22, 5 }
   0xf   : > { %s3292_s26 = scalar_lea.vmem %s4085_s0, %s2499_s23  ;;  %s3236_s23 = smov 38  }
  0x10   : > { %v3295_v0 = vld [vmem:[%s3292_s26] sm:$0xff]  ;;  %v3298_v1 = vld [vmem:[%s3292_s26 + $0x8] sm:$0xff]  ;;  %v3301_v2 = vld [vmem:[%s3292_s26 + $0x10] sm:$0xff] }
  0x11   : > { %v3305_v3 = vpack.i.bf16 %v3298_v1, %v3295_v0  ;;  %v3308_v4 = vld [vmem:[%s3292_s26 + $0x18] sm:$0xff] }
  0x12   : > { %v3316_v5 = vpack.i.bf16 %v3308_v4, %v3301_v2 }
  0x13   : > { %2762 = vrot.lane.b32.xlu1 %v3305_v3, %s3225_s27  ;;  %2752 = vrot.lane.b32.xlu0 %v3305_v3, %s3226_s28 }
  0x17   : > { %2767 = vrot.lane.b32.xlu1 %v3316_v5, %s3225_s27  ;;  %2757 = vrot.lane.b32.xlu0 %v3316_v5, %s3226_s28 }
  0x1b   : > { %2777 = vrot.lane.b32.xlu1 %v3316_v5, %s3227_s29  ;;  %2772 = vrot.lane.b32.xlu0 %v3305_v3, %s3227_s29 }
  0x1f   : > { %2787 = vrot.lane.b32.xlu1 %v3316_v5, %s3228_s30  ;;  %2782 = vrot.lane.b32.xlu0 %v3305_v3, %s3228_s30 }
  0x23   : > { %2797 = vrot.lane.b32.xlu1 %v3316_v5, %s3229_s7  ;;  %2792 = vrot.lane.b32.xlu0 %v3305_v3, %s3229_s7 }
  0x27   : > { %2807 = vrot.lane.b32.xlu1 %v3316_v5, %s3230_s8  ;;  %2802 = vrot.lane.b32.xlu0 %v3305_v3, %s3230_s8 }
  0x2b   : > { %2817 = vrot.lane.b32.xlu1 %v3316_v5, %s3232_s11  ;;  %2812 = vrot.lane.b32.xlu0 %v3305_v3, %s3232_s11 }
  0x2f   : > { %532 = vrot.lane.b32.xlu1 %v3298_v1, %s3233_s12  ;;  %530 = vrot.lane.b32.xlu0 %v3295_v0, %s3233_s12 }
  0x33   : > { %536 = vrot.lane.b32.xlu1 %v3308_v4, %s3233_s12  ;;  %534 = vrot.lane.b32.xlu0 %v3301_v2, %s3233_s12 }
  0x37   : > { %660 = vperm.xlu0 %2821, %v657_v8  }
  0x85   : > { %v2763_v11 = vpop.permute.xlu1 %2762  ;;  %v2753_v12 = vpop.permute.xlu0 %2752 }
  0x86   : > { %v2765_v13 = vunpack.i.h.bf16 %v2763_v11  ;;  %v2764_v14 = vunpack.i.l.bf16 %v2763_v11  ;;  %v2755_v15 = vunpack.i.h.bf16 %v2753_v12  ;;  %v2754_v16 = vunpack.i.l.bf16 %v2753_v12 }
  0x88   : > { %v386_v17 = vsel %vm383_vm1, %v2754_v16, %v2755_v15  ;;  %v407_v18 = vsel %vm404_vm2, %v2764_v14, %v2765_v13 }
  0x89   : > { %v2768_v19 = vpop.permute.xlu1 %2767  ;;  %v2758_v20 = vpop.permute.xlu0 %2757  ;;  %v2501_v21 = vpack.c.bf16 %v407_v18, %v386_v17 }
  0x8a   : > { %v2770_v22 = vunpack.i.h.bf16 %v2768_v19  ;;  %v2769_v23 = vunpack.i.l.bf16 %v2768_v19  ;;  %v2760_v24 = vunpack.i.h.bf16 %v2758_v20  ;;  %v2759_v25 = vunpack.i.l.bf16 %v2758_v20 }
  0x8b   : > { %2502 = vmatprep.subr.bf16.mxu0 %v2501_v21 }
  0x8c   : > { %v387_v26 = vsel %vm383_vm1, %v2760_v24, %v2754_v16  ;;  %v408_v27 = vsel %vm404_vm2, %v2770_v22, %v2764_v14  ;;  %v384_v28 = vsel %vm383_vm1, %v2759_v25, %v2760_v24  ;;  %v405_v29 = vsel %vm404_vm2, %v2769_v23, %v2770_v22 }
  0x8d   : > { %v2778_v30 = vpop.permute.xlu1 %2777  ;;  %v2773_v31 = vpop.permute.xlu0 %2772  ;;  %v2503_v32 = vpack.c.bf16 %v408_v27, %v387_v26  ;;  %v2517_v33 = vpack.c.bf16 %v405_v29, %v384_v28  ;;  %v385_v34 = vsel %vm383_vm1, %v2755_v15, %v2759_v25  ;;  %v406_v35 = vsel %vm404_vm2, %v2765_v13, %v2769_v23 }
  0x8e   : > { %v2780_v36 = vunpack.i.h.bf16 %v2778_v30  ;;  %v2779_v37 = vunpack.i.l.bf16 %v2778_v30  ;;  %v2775_v38 = vunpack.i.h.bf16 %v2773_v31  ;;  %v2774_v39 = vunpack.i.l.bf16 %v2773_v31 }
  0x8f   : > { %2504 = vmatpush1.bf16.msra.mxu0 %v2503_v32  ;;  %2518 = vmatprep.subr.bf16.mxu1 %v2517_v33  ;;  %v2519_v40 = vpack.c.bf16 %v406_v35, %v385_v34 }
  0x90   : > { %v428_v47 = vsel %vm425_vm3, %v2774_v39, %v2775_v38  ;;  %v426_v48 = vsel %vm425_vm3, %v2779_v37, %v2780_v36  ;;  %v429_v49 = vsel %vm425_vm3, %v2780_v36, %v2774_v39  ;;  %v427_v50 = vsel %vm425_vm3, %v2775_v38, %v2779_v37 }
  0x91   : > { %2520 = vmatpush1.bf16.msra.mxu1 %v2519_v40  ;;  %v2788_v41 = vpop.permute.xlu1 %2787  ;;  %v2783_v42 = vpop.permute.xlu0 %2782 }
  0x92   : > { %v2790_v43 = vunpack.i.h.bf16 %v2788_v41  ;;  %v2789_v44 = vunpack.i.l.bf16 %v2788_v41  ;;  %v2785_v45 = vunpack.i.h.bf16 %v2783_v42  ;;  %v2784_v46 = vunpack.i.l.bf16 %v2783_v42 }
  0x94   : > { %v449_v51 = vsel %vm446_vm4, %v2784_v46, %v2785_v45  ;;  %v447_v52 = vsel %vm446_vm4, %v2789_v44, %v2790_v43  ;;  %v450_v53 = vsel %vm446_vm4, %v2790_v43, %v2784_v46  ;;  %v448_v54 = vsel %vm446_vm4, %v2785_v45, %v2789_v44 }
  0x95   : > { %v2798_v55 = vpop.permute.xlu1 %2797  ;;  %v2793_v56 = vpop.permute.xlu0 %2792  ;;  %v2505_v57 = vpack.c.bf16 %v449_v51, %v428_v47  ;;  %v2521_v58 = vpack.c.bf16 %v447_v52, %v426_v48  ;;  %v2507_v59 = vpack.c.bf16 %v450_v53, %v429_v49  ;;  %v2523_v60 = vpack.c.bf16 %v448_v54, %v427_v50  ;;  %v547_v48 = vld [vmem:[%s4086_s1] sm:$0xff] }
  0x96   : > { %v2800_v61 = vunpack.i.h.bf16 %v2798_v55  ;;  %v2799_v62 = vunpack.i.l.bf16 %v2798_v55  ;;  %v2795_v63 = vunpack.i.h.bf16 %v2793_v56  ;;  %v2794_v6 = vunpack.i.l.bf16 %v2793_v56  ;;  %v368_v54 = vld [vmem:[%s4090_s5] sm:$0xf] }
  0x97   : > { %2506 = vmatprep.subr.bf16.mxu0 %v2505_v57  ;;  %2522 = vmatprep.subr.bf16.mxu1 %v2521_v58  ;;  %v815_v50 = vshrl.u32 %v381_v9, 7 }
  0x98   : > { %2508 = vmatpush1.bf16.msra.mxu0 %v2507_v59  ;;  %2524 = vmatpush1.bf16.msra.mxu1 %v2523_v60  ;;  %v477_v7 = vsel %vm475_vm5, %v2795_v63, %v2799_v62  ;;  %v479_v8 = vsel %vm475_vm5, %v2800_v61, %v2794_v6  ;;  %v478_v11 = vsel %vm475_vm5, %v2794_v6, %v2795_v63 }
  0x99   : > { %v2808_v12 = vpop.permute.xlu1 %2807  ;;  %v2803_v13 = vpop.permute.xlu0 %2802  ;;  %v2509_v14 = vpack.c.bf16 %v477_v7, %v3298_v1  ;;  %v2525_v15 = vpack.c.bf16 %v479_v8, %v3308_v4  ;;  %v2511_v16 = vpack.c.bf16 %v478_v11, %v3295_v0  ;;  %v476_v17 = vsel %vm475_vm5, %v2799_v62, %v2800_v61 }
  0x9a   : > { %v2810_v18 = vunpack.i.h.bf16 %v2808_v12  ;;  %v2809_v19 = vunpack.i.l.bf16 %v2808_v12  ;;  %v2805_v20 = vunpack.i.h.bf16 %v2803_v13  ;;  %v2804_v21 = vunpack.i.l.bf16 %v2803_v13 }
  0x9b   : > { %2510 = vmatprep.subr.bf16.mxu0 %v2509_v14  ;;  %2526 = vmatprep.subr.bf16.mxu1 %v2525_v15  ;;  %v2527_v22 = vpack.c.bf16 %v476_v17, %v3301_v2  ;;  %v816_v51 = vsub.s32 0, %v815_v50  ;;  %v824_v52 = vsub.s32 2, %v815_v50  ;;  %v820_v55 = vsub.s32 1, %v815_v50 }
  0x9c   : > { %2512 = vmatpush1.bf16.msra.mxu0 %v2511_v16  ;;  %v498_v29 = vsel %vm496_vm6, %v2805_v20, %v2809_v19  ;;  %v500_v30 = vsel %vm496_vm6, %v2810_v18, %v2804_v21  ;;  %v499_v31 = vsel %vm496_vm6, %v2804_v21, %v2805_v20  ;;  %v497_v32 = vsel %vm496_vm6, %v2809_v19, %v2810_v18 }
  0x9d   : > { %2528 = vmatpush1.bf16.msra.mxu1 %v2527_v22  ;;  %v2818_v23 = vpop.permute.xlu1 %2817  ;;  %v2813_v24 = vpop.permute.xlu0 %2812  ;;  %v3444_v59 = vrot.slane %v368_v54, %v816_v51  ;;  %v3446_v61 = vrot.slane %v368_v54, %v824_v52  ;;  %v828_v9 = vsub.s32 3, %v815_v50  ;;  %v3448_v11 = vrot.slane %v368_v54, %v820_v55 }
  0x9e   : > { %v2820_v25 = vunpack.i.h.bf16 %v2818_v23  ;;  %v2819_v26 = vunpack.i.l.bf16 %v2818_v23  ;;  %v2815_v27 = vunpack.i.h.bf16 %v2813_v24  ;;  %v2814_v28 = vunpack.i.l.bf16 %v2813_v24  ;;  %v2486_v24 = vld [vmem:[%s4086_s1 + $0x18] sm:$0xff] }
  0x9f   : > { %v3456_v16 = vrot.slane %v368_v54, %v828_v9 }
  0xa0   : > { %v519_v33 = vsel %vm517_vm7, %v2815_v27, %v2819_v26  ;;  %v521_v34 = vsel %vm517_vm7, %v2820_v25, %v2814_v28  ;;  %v520_v35 = vsel %vm517_vm7, %v2814_v28, %v2815_v27  ;;  %v518_v36 = vsel %vm517_vm7, %v2819_v26, %v2820_v25  ;;  %v2487_v25 = vld [vmem:[%s4087_s2 + $0x8] sm:$0xff] }
  0xa1   : > { %v533_v37 = vpop.permute.xlu1 %532  ;;  %v531_v38 = vpop.permute.xlu0 %530  ;;  %v2513_v39 = vpack.c.bf16 %v519_v33, %v498_v29  ;;  %v2529_v40 = vpack.c.bf16 %v521_v34, %v500_v30  ;;  %v2515_v41 = vpack.c.bf16 %v520_v35, %v499_v31  ;;  %v2531_v42 = vpack.c.bf16 %v518_v36, %v497_v32 }
  0xa2   : > { %v541_v49 = vsel %vm538_vm8, %v531_v38, %v533_v37 }
  0xa3   : > { %2514 = vmatprep.subr.bf16.mxu0 %v2513_v39  ;;  %2530 = vmatprep.subr.bf16.mxu1 %v2529_v40 }
  0xa4   : > { %2516 = vmatpush1.bf16.msra.mxu0 %v2515_v41  ;;  %2532 = vmatpush1.bf16.msra.mxu1 %v2531_v42 }
  0xa5   : > { %v537_v43 = vpop.permute.xlu1 %536  ;;  %v535_v44 = vpop.permute.xlu0 %534 }
  0xa6   : > { %v540_v45 = vsel %vm538_vm8, %v533_v37, %v535_v44  ;;  %v542_v46 = vsel %vm538_vm8, %v537_v43, %v531_v38  ;;  %v539_v47 = vsel %vm538_vm8, %v535_v44, %v537_v43 }
  0xa7   : > { %683 = vmatprep.subr.mxu0 %v540_v45  ;;  %754 = vmatprep.subr.mxu1 %v542_v46 }
  0xa8   : > { %684 = vmatpush1.msra.mxu0 %v541_v49  ;;  %755 = vmatpush1.msra.mxu1 %v539_v47 }
  0xa9   : > { %732 = vmatmul.mubr.f32.vlgmr.msra.gmra.mrb[0].mxu0 %v547_v48  ;;  %803 = vmatmul.mubr.f32.vlgmr.msra.gmra.mrb[0].mxu1 %v547_v48 }
  0xaa   : > { %2488 = vmatprep.mubr.msk.f32.mxu0 %vm663_vm0, %v2486_v24  ;;  %2489 = vmatprep.mubr.msk.f32.mxu1 %vm663_vm0, %v2486_v24 }
  0xb6   : > { %v661_v53 = vpop.permute.xlu0 %660 }
 0x17c   : > { %v733_v56 = vpop.f32.mrb[0].mxu0  ;;  %v804_v57 = vpop.f32.mrb[0].mxu1 }
 0x17d   : > { %v734_v58 = vadd.f32 %v733_v56, %v661_v53  ;;  %v805_v60 = vadd.f32 %v804_v57, %v661_v53  ;;  %v735_v62 = vpop.f32.mrb[1].mxu0  ;;  %v806_v63 = vpop.f32.mrb[1].mxu1 }
 0x17e   : > { %v736_v6 = vadd.f32 %v735_v62, %v661_v53  ;;  %v807_v12 = vadd.f32 %v806_v63, %v661_v53 }
 0x17f   : > { %v809_v7 = vmax.f32 %v734_v58, 0.0  ;;  %v811_v8 = vmax.f32 %v805_v60, 0.0 }
 0x180   : > { %v810_v13 = vmax.f32 %v736_v6, 0.0  ;;  %v812_v18 = vmax.f32 %v807_v12, 0.0 }
 0x181   : > { %v3451_v14 = vmul.f32 %v3444_v59, %v809_v7  ;;  %v3454_v15 = vmul.f32 %v3446_v61, %v811_v8 }
 0x182   : > { %v3459_v17 = vmul.f32 %v3448_v11, %v810_v13  ;;  %v3466_v21 = vmul.f32 %v3456_v16, %v812_v18 }
 0x183   : > { %v2827_v19 = vpack.i.bf16 %v3454_v15, %v3301_v2  ;;  %v2822_v20 = vpack.i.bf16 %v3451_v14, %v3295_v0 }
 0x184   : > { %v2902_v22 = vpack.i.bf16 %v3459_v17, %v3298_v1  ;;  %v2907_v23 = vpack.i.bf16 %v3466_v21, %v3308_v4 }
 0x185   : > { %2828 = vrot.lane.b32.xlu0 %v2827_v19, %s3234_s19  ;;  %2823 = vrot.lane.b32.xlu1 %v2822_v20, %s3234_s19 }
 0x189   : > { %2833 = vrot.lane.b32.xlu0 %v2822_v20, %s3235_s20  ;;  %2903 = vrot.lane.b32.xlu1 %v2902_v22, %s3234_s19 }
 0x18d   : > { %2838 = vrot.lane.b32.xlu0 %v2827_v19, %s3235_s20  ;;  %2908 = vrot.lane.b32.xlu1 %v2907_v23, %s3234_s19 }
 0x191   : > { %2843 = vrot.lane.b32.xlu0 %v2822_v20, %s3236_s23  ;;  %2913 = vrot.lane.b32.xlu1 %v2902_v22, %s3235_s20 }
 0x195   : > { %2848 = vrot.lane.b32.xlu0 %v2827_v19, %s3236_s23  ;;  %2918 = vrot.lane.b32.xlu1 %v2907_v23, %s3235_s20 }
 0x199   : > { %2853 = vrot.lane.b32.xlu0 %v2822_v20, %s3237_s24  ;;  %2923 = vrot.lane.b32.xlu1 %v2902_v22, %s3236_s23 }
 0x19d   : > { %2858 = vrot.lane.b32.xlu0 %v2827_v19, %s3237_s24  ;;  %2928 = vrot.lane.b32.xlu1 %v2907_v23, %s3236_s23  ;;  %s2500_s23 = sshll.u32 %s4093_s22, 4 }
 0x1a1   : > { %2863 = vrot.lane.b32.xlu0 %v2822_v20, %s3238_s25  ;;  %2933 = vrot.lane.b32.xlu1 %v2902_v22, %s3237_s24 }
 0x1a5   : > { %2868 = vrot.lane.b32.xlu0 %v2827_v19, %s3238_s25  ;;  %2938 = vrot.lane.b32.xlu1 %v2907_v23, %s3237_s24 }
 0x1a9   : > { %2873 = vrot.lane.b32.xlu0 %v2822_v20, %s3239_s9  ;;  %2943 = vrot.lane.b32.xlu1 %v2902_v22, %s3238_s25 }
 0x1ad   : > { %2878 = vrot.lane.b32.xlu0 %v2827_v19, %s3239_s9  ;;  %2948 = vrot.lane.b32.xlu1 %v2907_v23, %s3238_s25 }
 0x1b1   : > { %2883 = vrot.lane.b32.xlu0 %v2822_v20, %s3240_s10  ;;  %2953 = vrot.lane.b32.xlu1 %v2902_v22, %s3239_s9 }
 0x1b5   : > { %2888 = vrot.lane.b32.xlu0 %v2827_v19, %s3240_s10  ;;  %2958 = vrot.lane.b32.xlu1 %v2907_v23, %s3239_s9  ;;  %s251_s9 = scalar_lea.vmem %s4091_s6, %s2500_s23 }
 0x1b9   : > { %2893 = vrot.lane.b32.xlu0 %v2822_v20, %s3241_s13  ;;  %2963 = vrot.lane.b32.xlu1 %v2902_v22, %s3240_s10 }
 0x1bd   : > { %2898 = vrot.lane.b32.xlu0 %v2827_v19, %s3241_s13  ;;  %2968 = vrot.lane.b32.xlu1 %v2907_v23, %s3240_s10 }
 0x1c1   : > { %1301 = vperm.xlu0 %2821, %v2487_v25   ;;  %2973 = vrot.lane.b32.xlu1 %v2902_v22, %s3241_s13 }
 0x1c5   : > { %2998 = vrot.lane.b32.xlu0 %v3316_v5, %s3225_s27  ;;  %2978 = vrot.lane.b32.xlu1 %v2907_v23, %s3241_s13 }
 0x1c9   : > { %3018 = vrot.lane.b32.xlu0 %v3316_v5, %s3228_s30  ;;  %2983 = vrot.lane.b32.xlu1 %v2822_v20, %s3226_s28 }
 0x1cd   : > { %3028 = vrot.lane.b32.xlu0 %v3316_v5, %s3229_s7  ;;  %2988 = vrot.lane.b32.xlu1 %v2827_v19, %s3226_s28 }
 0x1d1   : > { %3033 = vrot.lane.b32.xlu0 %v2902_v22, %s3226_s28  ;;  %2993 = vrot.lane.b32.xlu1 %v3305_v3, %s3225_s27 }
 0x1d5   : > { %3038 = vrot.lane.b32.xlu0 %v2907_v23, %s3226_s28  ;;  %3003 = vrot.lane.b32.xlu1 %v2822_v20, %s3227_s29 }
 0x1d9   : > { %3043 = vrot.lane.b32.xlu0 %v2902_v22, %s3227_s29  ;;  %3008 = vrot.lane.b32.xlu1 %v2827_v19, %s3227_s29 }
 0x1dd   : > { %3048 = vrot.lane.b32.xlu0 %v2907_v23, %s3227_s29  ;;  %3013 = vrot.lane.b32.xlu1 %v3305_v3, %s3228_s30 }
 0x1e1   : > { %3023 = vrot.lane.b32.xlu1 %v3305_v3, %s3229_s7 }
 0x1f7   : > { %v2829_v5 = vpop.permute.xlu0 %2828  ;;  %v2824_v26 = vpop.permute.xlu1 %2823 }
 0x1f8   : > { %v2826_v29 = vunpack.i.h.bf16 %v2824_v26  ;;  %v2825_v30 = vunpack.i.l.bf16 %v2824_v26  ;;  %v2831_v35 = vunpack.i.h.bf16 %v2829_v5  ;;  %v2830_v36 = vunpack.i.l.bf16 %v2829_v5 }
 0x1fb   : > { %v2834_v27 = vpop.permute.xlu0 %2833  ;;  %v2904_v28 = vpop.permute.xlu1 %2903 }
 0x1fc   : > { %v2906_v31 = vunpack.i.h.bf16 %v2904_v28  ;;  %v2905_v32 = vunpack.i.l.bf16 %v2904_v28  ;;  %v2836_v47 = vunpack.i.h.bf16 %v2834_v27  ;;  %v2835_v52 = vunpack.i.l.bf16 %v2834_v27 }
 0x1fe   : > { %v871_v33 = vsel %vm866_vm9, %v2825_v30, %v2905_v32  ;;  %v872_v34 = vsel %vm866_vm9, %v2826_v29, %v2906_v31  ;;  %v870_v41 = vsel %vm866_vm9, %v2906_v31, %v2831_v35  ;;  %v869_v42 = vsel %vm866_vm9, %v2905_v32, %v2830_v36 }
 0x1ff   : > { %v2839_v37 = vpop.permute.xlu0 %2838  ;;  %v2909_v3 = vpop.permute.xlu1 %2908  ;;  %v2533_v38 = vpack.c.bf16 %v872_v34, %v871_v33  ;;  %v2571_v53 = vpack.c.bf16 %v870_v41, %v869_v42 }
 0x200   : > { %v2911_v39 = vunpack.i.h.bf16 %v2909_v3  ;;  %v2910_v40 = vunpack.i.l.bf16 %v2909_v3  ;;  %v2841_v58 = vunpack.i.h.bf16 %v2839_v37  ;;  %v2840_v60 = vunpack.i.l.bf16 %v2839_v37 }
 0x201   : > { %2534 = vmatprep.subr.bf16.mxu0 %v2533_v38 }
 0x202   : > { %v873_v43 = vsel %vm866_vm9, %v2910_v40, %v2825_v30  ;;  %v874_v44 = vsel %vm866_vm9, %v2911_v39, %v2826_v29  ;;  %v867_v45 = vsel %vm866_vm9, %v2830_v36, %v2910_v40  ;;  %v868_v46 = vsel %vm866_vm9, %v2831_v35, %v2911_v39 }
 0x203   : > { %v2535_v48 = vpack.c.bf16 %v874_v44, %v873_v43  ;;  %v2844_v49 = vpop.permute.xlu0 %2843  ;;  %v2914_v50 = vpop.permute.xlu1 %2913  ;;  %v2569_v51 = vpack.c.bf16 %v868_v46, %v867_v45  ;;  %vm1169_vm9 = vcmp.lt.s32.totalorder %v3359_v10, 86 }
 0x204   : > { %v2916_v54 = vunpack.i.h.bf16 %v2914_v50  ;;  %v2915_v55 = vunpack.i.l.bf16 %v2914_v50  ;;  %v2846_v22 = vunpack.i.h.bf16 %v2844_v49  ;;  %v2845_v26 = vunpack.i.l.bf16 %v2844_v49 }
 0x205   : > { %2536 = vmatpush1.bf16.msra.mxu0 %v2535_v48  ;;  %2570 = vmatprep.subr.bf16.mxu1 %v2569_v51 }
 0x206   : > { %2572 = vmatpush1.bf16.msra.mxu1 %v2571_v53  ;;  %v912_v56 = vsel %vm907_vm10, %v2835_v52, %v2915_v55  ;;  %v913_v57 = vsel %vm907_vm10, %v2836_v47, %v2916_v54  ;;  %v911_v8 = vsel %vm907_vm10, %v2916_v54, %v2841_v58  ;;  %v910_v12 = vsel %vm907_vm10, %v2915_v55, %v2840_v60 }
 0x207   : > { %v2849_v62 = vpop.permute.xlu0 %2848  ;;  %v2919_v63 = vpop.permute.xlu1 %2918  ;;  %v2537_v6 = vpack.c.bf16 %v913_v57, %v912_v56  ;;  %v2575_v27 = vpack.c.bf16 %v911_v8, %v910_v12 }
 0x208   : > { %v2921_v9 = vunpack.i.h.bf16 %v2919_v63  ;;  %v2920_v7 = vunpack.i.l.bf16 %v2919_v63  ;;  %v2851_v32 = vunpack.i.h.bf16 %v2849_v62  ;;  %v2850_v33 = vunpack.i.l.bf16 %v2849_v62 }
 0x209   : > { %2538 = vmatprep.subr.bf16.mxu0 %v2537_v6 }
 0x20a   : > { %v915_v13 = vsel %vm907_vm10, %v2921_v9, %v2836_v47  ;;  %v914_v18 = vsel %vm907_vm10, %v2920_v7, %v2835_v52  ;;  %v908_v19 = vsel %vm907_vm10, %v2840_v60, %v2920_v7  ;;  %v909_v20 = vsel %vm907_vm10, %v2841_v58, %v2921_v9 }
 0x20b   : > { %v2539_v23 = vpack.c.bf16 %v915_v13, %v914_v18  ;;  %v2854_v24 = vpop.permute.xlu0 %2853  ;;  %v2924_v25 = vpop.permute.xlu1 %2923  ;;  %v2573_v5 = vpack.c.bf16 %v909_v20, %v908_v19 }
 0x20c   : > { %v2926_v28 = vunpack.i.h.bf16 %v2924_v25  ;;  %v2925_v29 = vunpack.i.l.bf16 %v2924_v25  ;;  %v2856_v44 = vunpack.i.h.bf16 %v2854_v24  ;;  %v2855_v49 = vunpack.i.l.bf16 %v2854_v24 }
 0x20d   : > { %2540 = vmatpush1.bf16.msra.mxu0 %v2539_v23  ;;  %2574 = vmatprep.subr.bf16.mxu1 %v2573_v5  ;;  %v3575_v23 = vpack.c.bf16 %v3459_v17, %v3298_v1 }
 0x20e   : > { %2576 = vmatpush1.bf16.msra.mxu1 %v2575_v27  ;;  %v953_v30 = vsel %vm948_vm11, %v2845_v26, %v2925_v29  ;;  %v954_v31 = vsel %vm948_vm11, %v2846_v22, %v2926_v28  ;;  %v952_v38 = vsel %vm948_vm11, %v2926_v28, %v2851_v32  ;;  %v951_v39 = vsel %vm948_vm11, %v2925_v29, %v2850_v33 }
 0x20f   : > { %v2859_v34 = vpop.permute.xlu0 %2858  ;;  %v2929_v35 = vpop.permute.xlu1 %2928  ;;  %v2541_v36 = vpack.c.bf16 %v954_v31, %v953_v30  ;;  %v2579_v50 = vpack.c.bf16 %v952_v38, %v951_v39  ;;  %v3579_v28 = vpack.c.bf16 %v3466_v21, %v3308_v4 }
 0x210   : > { %v2931_v37 = vunpack.i.h.bf16 %v2929_v35  ;;  %v2930_v3 = vunpack.i.l.bf16 %v2929_v35  ;;  %v2861_v55 = vunpack.i.h.bf16 %v2859_v34  ;;  %v2860_v56 = vunpack.i.l.bf16 %v2859_v34 }
 0x211   : > { %2542 = vmatprep.subr.bf16.mxu0 %v2541_v36  ;;  %v3595_v34 = vpack.c.bf16 %v3454_v15, %v3301_v2 }
 0x212   : > { %v956_v40 = vsel %vm948_vm11, %v2931_v37, %v2846_v22  ;;  %v955_v41 = vsel %vm948_vm11, %v2930_v3, %v2845_v26  ;;  %v949_v42 = vsel %vm948_vm11, %v2850_v33, %v2930_v3  ;;  %v950_v43 = vsel %vm948_vm11, %v2851_v32, %v2931_v37 }
 0x213   : > { %v2543_v45 = vpack.c.bf16 %v956_v40, %v955_v41  ;;  %v3551_v46 = vpop.permute.xlu0 %2863  ;;  %v2934_v47 = vpop.permute.xlu1 %2933  ;;  %v2577_v48 = vpack.c.bf16 %v950_v43, %v949_v42  ;;  %v3589_v33 = vpack.c.bf16 %v3451_v14, %v3295_v0 }
 0x214   : > { %v2936_v51 = vunpack.i.h.bf16 %v2934_v47  ;;  %v2935_v52 = vunpack.i.l.bf16 %v2934_v47  ;;  %v2866_v29 = vunpack.i.h.bf16 %v3551_v46  ;;  %v2865_v30 = vunpack.i.l.bf16 %v3551_v46 }
 0x215   : > { %2544 = vmatpush1.bf16.msra.mxu0 %v2543_v45  ;;  %2578 = vmatprep.subr.bf16.mxu1 %v2577_v48 }
 0x216   : > { %2580 = vmatpush1.bf16.msra.mxu1 %v2579_v50  ;;  %v994_v53 = vsel %vm989_vm12, %v2855_v49, %v2935_v52  ;;  %v995_v54 = vsel %vm989_vm12, %v2856_v44, %v2936_v51  ;;  %v993_v6 = vsel %vm989_vm12, %v2936_v51, %v2861_v55  ;;  %v992_v9 = vsel %vm989_vm12, %v2935_v52, %v2860_v56 }
 0x217   : > { %v2869_v57 = vpop.permute.xlu0 %2868  ;;  %v2939_v58 = vpop.permute.xlu1 %2938  ;;  %v2545_v60 = vpack.c.bf16 %v995_v54, %v994_v53  ;;  %v2583_v24 = vpack.c.bf16 %v993_v6, %v992_v9 }
 0x218   : > { %v2941_v62 = vunpack.i.h.bf16 %v2939_v58  ;;  %v2940_v63 = vunpack.i.l.bf16 %v2939_v58  ;;  %v2870_v25 = vunpack.i.l.bf16 %v2869_v57  ;;  %v2871_v27 = vunpack.i.h.bf16 %v2869_v57 }
 0x219   : > { %2546 = vmatprep.subr.bf16.mxu0 %v2545_v60 }
 0x21a   : > { %v997_v7 = vsel %vm989_vm12, %v2941_v62, %v2856_v44  ;;  %v996_v8 = vsel %vm989_vm12, %v2940_v63, %v2855_v49  ;;  %v990_v12 = vsel %vm989_vm12, %v2860_v56, %v2940_v63  ;;  %v991_v13 = vsel %vm989_vm12, %v2861_v55, %v2941_v62 }
 0x21b   : > { %v2547_v18 = vpack.c.bf16 %v997_v7, %v996_v8  ;;  %v3570_v19 = vpop.permute.xlu0 %2873  ;;  %v2944_v20 = vpop.permute.xlu1 %2943  ;;  %v2581_v22 = vpack.c.bf16 %v991_v13, %v990_v12 }
 0x21c   : > { %v2946_v5 = vunpack.i.h.bf16 %v2944_v20  ;;  %v2945_v26 = vunpack.i.l.bf16 %v2944_v20  ;;  %v2876_v38 = vunpack.i.h.bf16 %v3570_v19  ;;  %v2875_v42 = vunpack.i.l.bf16 %v3570_v19 }
 0x21d   : > { %2548 = vmatpush1.bf16.msra.mxu0 %v2547_v18  ;;  %2582 = vmatprep.subr.bf16.mxu1 %v2581_v22 }
 0x21e   : > { %2550 = vmatprep.subr.bf16.mxu0 %v3575_v23  ;;  %2584 = vmatpush1.bf16.msra.mxu1 %v2583_v24  ;;  %v1049_v1 = vsel %vm1046_vm13, %v2945_v26, %v2870_v25  ;;  %v1050_v4 = vsel %vm1046_vm13, %v2946_v5, %v2871_v27  ;;  %v1052_v35 = vsel %vm1046_vm13, %v2866_v29, %v2946_v5 }
 0x21f   : > { %v2879_v31 = vpop.permute.xlu0 %2878  ;;  %v2949_v32 = vpop.permute.xlu1 %2948  ;;  %2586 = vmatprep.subr.bf16.mxu1 %v3579_v28  ;;  %v1051_v36 = vsel %vm1046_vm13, %v2865_v30, %v2945_v26  ;;  %v2553_v0 = vpack.c.bf16 %v1050_v4, %v1049_v1 }
 0x220   : > { %v2951_v37 = vunpack.i.h.bf16 %v2949_v32  ;;  %v2950_v3 = vunpack.i.l.bf16 %v2949_v32  ;;  %v2555_v43 = vpack.c.bf16 %v1052_v35, %v1051_v36  ;;  %v2881_v48 = vunpack.i.h.bf16 %v2879_v31 }
 0x221   : > { %2552 = vmatpush1.bf16.msra.mxu0 %v3589_v33  ;;  %v2880_v49 = vunpack.i.l.bf16 %v2879_v31 }
 0x222   : > { %v1048_v39 = vsel %vm1046_vm13, %v2871_v27, %v2951_v37  ;;  %v1047_v2 = vsel %vm1046_vm13, %v2870_v25, %v2950_v3  ;;  %2588 = vmatpush1.bf16.msra.mxu1 %v3595_v34  ;;  %v1053_v40 = vsel %vm1046_vm13, %v2950_v3, %v2865_v30  ;;  %v1054_v41 = vsel %vm1046_vm13, %v2951_v37, %v2866_v29 }
 0x223   : > { %v2591_v44 = vpack.c.bf16 %v1048_v39, %v1047_v2  ;;  %2554 = vmatprep.subr.bf16.mxu0 %v2553_v0  ;;  %v2884_v45 = vpop.permute.xlu0 %2883  ;;  %v2954_v46 = vpop.permute.xlu1 %2953  ;;  %v2589_v47 = vpack.c.bf16 %v1054_v41, %v1053_v40 }
 0x224   : > { %v2956_v50 = vunpack.i.h.bf16 %v2954_v46  ;;  %v2955_v51 = vunpack.i.l.bf16 %v2954_v46  ;;  %v2886_v12 = vunpack.i.h.bf16 %v2884_v45  ;;  %v2885_v13 = vunpack.i.l.bf16 %v2884_v45 }
 0x225   : > { %2556 = vmatpush1.bf16.msra.mxu0 %v2555_v43  ;;  %2590 = vmatprep.subr.bf16.mxu1 %v2589_v47 }
 0x226   : > { %v1093_v52 = vsel %vm1087_vm14, %v2876_v38, %v2956_v50  ;;  %v1092_v53 = vsel %vm1087_vm14, %v2875_v42, %v2955_v51  ;;  %2592 = vmatpush1.bf16.msra.mxu1 %v2591_v44  ;;  %v1090_v54 = vsel %vm1087_vm14, %v2955_v51, %v2880_v49  ;;  %v1091_v55 = vsel %vm1087_vm14, %v2956_v50, %v2881_v48 }
 0x227   : > { %v2559_v56 = vpack.c.bf16 %v1093_v52, %v1092_v53  ;;  %v2889_v57 = vpop.permute.xlu0 %2888  ;;  %v2959_v58 = vpop.permute.xlu1 %2958  ;;  %v2557_v60 = vpack.c.bf16 %v1091_v55, %v1090_v54 }
 0x228   : > { %v2961_v62 = vunpack.i.h.bf16 %v2959_v58  ;;  %v2960_v63 = vunpack.i.l.bf16 %v2959_v58  ;;  %v2891_v24 = vunpack.i.h.bf16 %v2889_v57  ;;  %v2890_v25 = vunpack.i.l.bf16 %v2889_v57 }
 0x229   : > { %2558 = vmatprep.subr.bf16.mxu0 %v2557_v60  ;;  %v2485_v60 = vld [vmem:[%s4086_s1 + $0x10] sm:$0xff] }
 0x22a   : > { %v1089_v6 = vsel %vm1087_vm14, %v2881_v48, %v2961_v62  ;;  %v1088_v9 = vsel %vm1087_vm14, %v2880_v49, %v2960_v63  ;;  %2560 = vmatpush1.bf16.msra.mxu0 %v2559_v56  ;;  %v1094_v7 = vsel %vm1087_vm14, %v2960_v63, %v2875_v42  ;;  %v1095_v8 = vsel %vm1087_vm14, %v2961_v62, %v2876_v38 }
 0x22b   : > { %v2595_v18 = vpack.c.bf16 %v1089_v6, %v1088_v9  ;;  %v2894_v19 = vpop.permute.xlu0 %2893  ;;  %v2964_v20 = vpop.permute.xlu1 %2963  ;;  %v2593_v22 = vpack.c.bf16 %v1095_v8, %v1094_v7 }
 0x22c   : > { %v2966_v5 = vunpack.i.h.bf16 %v2964_v20  ;;  %v2965_v26 = vunpack.i.l.bf16 %v2964_v20  ;;  %v2896_v2 = vunpack.i.h.bf16 %v2894_v19  ;;  %v2895_v40 = vunpack.i.l.bf16 %v2894_v19 }
 0x22d   : > { %2594 = vmatprep.subr.bf16.mxu1 %v2593_v22 }
 0x22e   : > { %v1134_v27 = vsel %vm1128_vm15, %v2886_v12, %v2966_v5  ;;  %v1133_v29 = vsel %vm1128_vm15, %v2885_v13, %v2965_v26  ;;  %2596 = vmatpush1.bf16.msra.mxu1 %v2595_v18  ;;  %v1131_v30 = vsel %vm1128_vm15, %v2965_v26, %v2890_v25  ;;  %v1132_v1 = vsel %vm1128_vm15, %v2966_v5, %v2891_v24 }
 0x22f   : > { %v2563_v31 = vpack.c.bf16 %v1134_v27, %v1133_v29  ;;  %v2969_v32 = vpop.permute.xlu1 %2968  ;;  %v2561_v4 = vpack.c.bf16 %v1132_v1, %v1131_v30  ;;  %v2899_v37 = vpop.permute.xlu0 %2898 }
 0x230   : > { %v2971_v35 = vunpack.i.h.bf16 %v2969_v32  ;;  %v2970_v36 = vunpack.i.l.bf16 %v2969_v32  ;;  %v2901_v44 = vunpack.i.h.bf16 %v2899_v37  ;;  %v2900_v45 = vunpack.i.l.bf16 %v2899_v37 }
 0x231   : > { %2562 = vmatprep.subr.bf16.mxu0 %v2561_v4 }
 0x232   : > { %v1130_v3 = vsel %vm1128_vm15, %v2891_v24, %v2971_v35  ;;  %v1129_v38 = vsel %vm1128_vm15, %v2890_v25, %v2970_v36  ;;  %2564 = vmatpush1.bf16.msra.mxu0 %v2563_v31  ;;  %v1135_v0 = vsel %vm1128_vm15, %v2970_v36, %v2885_v13  ;;  %v1136_v39 = vsel %vm1128_vm15, %v2971_v35, %v2886_v12 }
 0x233   : > { %v2599_v41 = vpack.c.bf16 %v1130_v3, %v1129_v38  ;;  %v2974_v42 = vpop.permute.xlu1 %2973  ;;  %v2597_v43 = vpack.c.bf16 %v1136_v39, %v1135_v0 }
 0x234   : > { %v2976_v46 = vunpack.i.h.bf16 %v2974_v42  ;;  %v2975_v47 = vunpack.i.l.bf16 %v2974_v42 }
 0x235   : > { %2598 = vmatprep.subr.bf16.mxu1 %v2597_v43 }
 0x236   : > { %v1175_v48 = vsel %vm1169_vm9, %v2896_v2, %v2976_v46  ;;  %v1174_v49 = vsel %vm1169_vm9, %v2895_v40, %v2975_v47  ;;  %2600 = vmatpush1.bf16.msra.mxu1 %v2599_v41  ;;  %v1172_v50 = vsel %vm1169_vm9, %v2975_v47, %v2900_v45  ;;  %v1173_v51 = vsel %vm1169_vm9, %v2976_v46, %v2901_v44 }
 0x237   : > { %v2567_v52 = vpack.c.bf16 %v1175_v48, %v1174_v49  ;;  %v2979_v53 = vpop.permute.xlu1 %2978  ;;  %v2565_v54 = vpack.c.bf16 %v1173_v51, %v1172_v50 }
 0x238   : > { %v2981_v55 = vunpack.i.h.bf16 %v2979_v53  ;;  %v2980_v56 = vunpack.i.l.bf16 %v2979_v53 }
 0x239   : > { %2566 = vmatprep.subr.bf16.mxu0 %v2565_v54 }
 0x23a   : > { %v1171_v57 = vsel %vm1169_vm9, %v2901_v44, %v2981_v55  ;;  %v1170_v58 = vsel %vm1169_vm9, %v2900_v45, %v2980_v56  ;;  %2568 = vmatpush1.bf16.msra.mxu0 %v2567_v52  ;;  %v1176_v62 = vsel %vm1169_vm9, %v2980_v56, %v2895_v40  ;;  %v1177_v63 = vsel %vm1169_vm9, %v2981_v55, %v2896_v2 }
 0x23b   : > { %v2603_v6 = vpack.c.bf16 %v1171_v57, %v1170_v58  ;;  %v2601_v9 = vpack.c.bf16 %v1177_v63, %v1176_v62  ;;  %v2984_v13 = vpop.permute.xlu1 %2983 }
 0x23c   : > { %v2986_v20 = vunpack.i.h.bf16 %v2984_v13  ;;  %v2985_v22 = vunpack.i.l.bf16 %v2984_v13  ;;  %v3214_v13 = vld [vmem:[%s3292_s26 + $0x18] sm:$0xff] }
 0x23d   : > { %1372 = vmatmul.mubr.f32.vlgmr.msra.gmra.mrb[2].mxu0 %v2485_v60  ;;  %2602 = vmatprep.subr.bf16.mxu1 %v2601_v9  ;;  %v3213_v9 = vld [vmem:[%s3292_s26 + $0x8] sm:$0xff] }
 0x23e   : > { %2604 = vmatpush1.bf16.msra.mxu1 %v2603_v6 }
 0x23f   : > { %v2989_v24 = vpop.permute.xlu1 %2988 }
 0x240   : > { %v1302_v7 = vpop.permute.xlu0 %1301  ;;  %v2991_v29 = vunpack.i.h.bf16 %v2989_v24  ;;  %v2990_v30 = vunpack.i.l.bf16 %v2989_v24 }
 0x241   : > { %1443 = vmatmul.mubr.f32.vlgmr.msra.gmra.mrb[2].mxu1 %v2485_v60 }
 0x244   : > { %v3667_v8 = vpop.permute.xlu0 %2998 }
 0x248   : > { %v3669_v12 = vpop.permute.xlu0 %3018 }
 0x24c   : > { %v3671_v18 = vpop.permute.xlu0 %3028 }
 0x250   : > { %v3034_v19 = vpop.permute.xlu0 %3033 }
 0x251   : > { %v3036_v25 = vunpack.i.h.bf16 %v3034_v19  ;;  %v3035_v5 = vunpack.i.l.bf16 %v3034_v19  ;;  %v3122_v19 = vpack.i.bf16 %v3466_v21, %v3214_v13 }
 0x253   : > { %v1503_v26 = vsel %vm383_vm1, %v2985_v22, %v3035_v5  ;;  %v1504_v27 = vsel %vm383_vm1, %v2986_v20, %v3036_v25  ;;  %v1500_v35 = vsel %vm383_vm1, %v3035_v5, %v2990_v30  ;;  %v1501_v36 = vsel %vm383_vm1, %v3036_v25, %v2991_v29  ;;  %v2492_v5 = vld [vmem:[%s4087_s2 + $0x10] sm:$0xff] }
 0x254   : > { %v3039_v1 = vpop.permute.xlu0 %3038  ;;  %v2605_v31 = vpack.c.bf16 %v1504_v27, %v1503_v26  ;;  %v2659_v40 = vpack.c.bf16 %v1501_v36, %v1500_v35  ;;  %v2994_v26 = vpop.permute.xlu1 %2993  ;;  %v3001_v35 = vunpack.i.h.bf16 %v3667_v8  ;;  %v3000_v36 = vunpack.i.l.bf16 %v3667_v8 }
 0x255   : > { %v3041_v32 = vunpack.i.h.bf16 %v3039_v1  ;;  %v3040_v4 = vunpack.i.l.bf16 %v3039_v1 }
 0x256   : > { %2606 = vmatprep.subr.bf16.mxu0 %v2605_v31 }
 0x257   : > { %v1506_v37 = vsel %vm383_vm1, %v3040_v4, %v2985_v22  ;;  %v1507_v3 = vsel %vm383_vm1, %v3041_v32, %v2986_v20  ;;  %v1497_v38 = vsel %vm383_vm1, %v2990_v30, %v3040_v4  ;;  %v1498_v0 = vsel %vm383_vm1, %v2991_v29, %v3041_v32  ;;  %v3215_v20 = vld [vmem:[%s3292_s26 + $0x10] sm:$0xff] }
 0x258   : > { %v2607_v39 = vpack.c.bf16 %v1507_v3, %v1506_v37  ;;  %v2657_v2 = vpack.c.bf16 %v1498_v0, %v1497_v38  ;;  %v3132_v22 = vpack.i.bf16 %v3214_v13, %v3215_v20  ;;  %v3772_v27 = vpop.permute.xlu1 %3003  ;;  %v3778_v1 = vpop.permute.xlu0 %3043 }
 0x25a   : > { %2608 = vmatpush1.bf16.msra.mxu0 %v2607_v39  ;;  %2658 = vmatprep.subr.bf16.mxu1 %v2657_v2 }
 0x25b   : > { %2660 = vmatpush1.bf16.msra.mxu1 %v2659_v40  ;;  %v1557_v40 = vsel %vm404_vm2, %v3000_v36, %v3001_v35 }
 0x25c   : > { %v3774_v29 = vpop.permute.xlu1 %3008  ;;  %v3782_v4 = vpop.permute.xlu0 %3048 }
 0x260   : > { %v3776_v30 = vpop.permute.xlu1 %3013 }
 0x264   : > { %v3780_v31 = vpop.permute.xlu1 %3023 }
 0x310   : > { %v1373_v41 = vpop.f32.mrb[2].mxu0 }
 0x311   : > { %v1374_v42 = vadd.f32 %v1373_v41, %v1302_v7  ;;  %v1375_v43 = vpop.f32.mrb[3].mxu0  ;;  %v2996_v41 = vunpack.i.h.bf16 %v2994_v26 }
 0x312   : > { %v1376_v45 = vadd.f32 %v1375_v43, %v1302_v7 }
 0x313   : > { %v1449_v44 = vmax.f32 %v1374_v42, 0.0  ;;  %v2995_v42 = vunpack.i.l.bf16 %v2994_v26  ;;  %v1560_v8 = vsel %vm404_vm2, %v2996_v41, %v3000_v36 }
 0x314   : > { %v1444_v46 = vpop.f32.mrb[2].mxu1  ;;  %v1450_v53 = vmax.f32 %v1376_v45, 0.0 }
 0x315   : > { %v3690_v47 = vmul.f32 %v1449_v44, %v3444_v59  ;;  %v1445_v48 = vadd.f32 %v1444_v46, %v1302_v7  ;;  %v1446_v49 = vpop.f32.mrb[3].mxu1  ;;  %v1566_v46 = vsel %vm404_vm2, %v3001_v35, %v2995_v42 }
 0x316   : > { %v1447_v50 = vadd.f32 %v1446_v49, %v1302_v7  ;;  %v3704_v58 = vmul.f32 %v1450_v53, %v3448_v11  ;;  %v3112_v7 = vpack.i.bf16 %v3459_v17, %v3213_v9  ;;  %v3005_v49 = vunpack.i.l.bf16 %v3772_v27 }
 0x317   : > { %v1451_v51 = vmax.f32 %v1445_v48, 0.0  ;;  %v3052_v52 = vpack.i.bf16 %v3690_v47, %v3451_v14  ;;  %v3006_v48 = vunpack.i.h.bf16 %v3772_v27 }
 0x318   : > { %v1452_v54 = vmax.f32 %v1447_v50, 0.0  ;;  %v3092_v62 = vpack.i.bf16 %v3704_v58, %v3459_v17  ;;  %v3072_v6 = vpack.i.bf16 %v3704_v58, %v3690_v47  ;;  %v3216_v17 = vld [vmem:[%s3292_s26] sm:$0xff] }
 0x319   : > { %v3695_v55 = vmul.f32 %v1451_v51, %v3446_v61  ;;  %3053 = vrot.lane.b32.xlu1 %v3052_v52, %s3225_s27  ;;  %v3107_v24 = vpack.i.bf16 %v3451_v14, %v3216_v17  ;;  %v3127_v25 = vpack.i.bf16 %v3213_v9, %v3216_v17  ;;  %v2491_v14 = vld [vmem:[%s4086_s1 + $0x28] sm:$0xff]  ;;  %v3011_v51 = vunpack.i.h.bf16 %v3774_v29 }
 0x31a   : > { %v3699_v56 = vmul.f32 %v1452_v54, %v3456_v16  ;;  %2493 = vmatprep.mubr.msk.f32.mxu0 %vm663_vm0, %v2491_v14  ;;  %2494 = vmatprep.mubr.msk.f32.mxu1 %vm663_vm0, %v2491_v14  ;;  %vm2263_vm0 = vcmask 261120  }
 0x31b   : > { %v3057_v57 = vpack.i.bf16 %v3695_v55, %v3454_v15 }
 0x31c   : > { %v3087_v60 = vpack.i.bf16 %v3699_v56, %v3695_v55  ;;  %v3097_v63 = vpack.i.bf16 %v3699_v56, %v3466_v21  ;;  %v3117_v21 = vpack.i.bf16 %v3454_v15, %v3215_v20  ;;  %v2257_v15 = vld [vmem:[%s4089_s4] sm:$0xf]  ;;  %v3051_v20 = vunpack.i.h.bf16 %v3782_v4 }
 0x31d   : > { %3058 = vrot.lane.b32.xlu1 %v3057_v57, %s3225_s27 }
 0x31e   : > { %3088 = vrot.lane.b32.xlu0 %v3087_v60, %s3226_s28 }
 0x321   : > { %3063 = vrot.lane.b32.xlu1 %v3052_v52, %s3228_s30 }
 0x322   : > { %3093 = vrot.lane.b32.xlu0 %v3092_v62, %s3225_s27 }
 0x325   : > { %3068 = vrot.lane.b32.xlu1 %v3057_v57, %s3228_s30 }
 0x326   : > { %3098 = vrot.lane.b32.xlu0 %v3097_v63, %s3225_s27 }
 0x329   : > { %3073 = vrot.lane.b32.xlu1 %v3072_v6, %s3226_s28 }
 0x32a   : > { %3113 = vrot.lane.b32.xlu0 %v3112_v7, %s3230_s8 }
 0x32d   : > { %3078 = vrot.lane.b32.xlu1 %v3052_v52, %s3229_s7 }
 0x32e   : > { %3123 = vrot.lane.b32.xlu0 %v3122_v19, %s3230_s8 }
 0x331   : > { %3083 = vrot.lane.b32.xlu1 %v3057_v57, %s3229_s7 }
 0x332   : > { %3133 = vrot.lane.b32.xlu0 %v3132_v22, %s3232_s11 }
 0x335   : > { %3103 = vrot.lane.b32.xlu1 %v3072_v6, %s3227_s29 }
 0x336   : > { %3148 = vrot.lane.b32.xlu0 %v3087_v60, %s3227_s29 }
 0x339   : > { %3108 = vrot.lane.b32.xlu1 %v3107_v24, %s3230_s8 }
 0x33a   : > { %3153 = vrot.lane.b32.xlu0 %v3092_v62, %s3228_s30 }
 0x33d   : > { %3118 = vrot.lane.b32.xlu1 %v3117_v21, %s3230_s8 }
 0x33e   : > { %3158 = vrot.lane.b32.xlu0 %v3097_v63, %s3228_s30 }
 0x341   : > { %3128 = vrot.lane.b32.xlu1 %v3127_v25, %s3232_s11  ;;  %v1563_v25 = vsel %vm404_vm2, %v2995_v42, %v2996_v41 }
 0x342   : > { %3163 = vrot.lane.b32.xlu0 %v3092_v62, %s3229_s7 }
 0x345   : > { %3138 = vrot.lane.b32.xlu1 %v3052_v52, %s3232_s11 }
 0x346   : > { %3168 = vrot.lane.b32.xlu0 %v3097_v63, %s3229_s7 }
 0x349   : > { %3143 = vrot.lane.b32.xlu1 %v3057_v57, %s3232_s11  ;;  %v3010_v57 = vunpack.i.l.bf16 %v3774_v29 }
 0x34a   : > { %3183 = vrot.lane.b32.xlu0 %v3112_v7, %s3233_s12 }
 0x34d   : > { %3173 = vrot.lane.b32.xlu1 %v3072_v6, %s3230_s8  ;;  %v3050_v6 = vunpack.i.l.bf16 %v3782_v4 }
 0x34e   : > { %3193 = vrot.lane.b32.xlu0 %v3087_v60, %s3230_s8  ;;  %v3046_v60 = vunpack.i.h.bf16 %v3778_v1 }
 0x351   : > { %3178 = vrot.lane.b32.xlu1 %v3107_v24, %s3233_s12 }
 0x352   : > { %3198 = vrot.lane.b32.xlu0 %v3092_v62, %s3232_s11  ;;  %v3045_v62 = vunpack.i.l.bf16 %v3778_v1 }
 0x355   : > { %3188 = vrot.lane.b32.xlu1 %v3117_v21, %s3233_s12 }
 0x356   : > { %3203 = vrot.lane.b32.xlu0 %v3097_v63, %s3232_s11 }
 0x359   : > { %1921 = vrot.lane.b32.xlu1 %v3690_v47, %s3233_s12 }
 0x35a   : > { %3208 = vrot.lane.b32.xlu0 %v3122_v19, %s3233_s12 }
 0x35d   : > { %1933 = vrot.lane.b32.xlu1 %v3695_v55, %s3233_s12 }
 0x35e   : > { %1927 = vrot.lane.b32.xlu0 %v3704_v58, %s3233_s12 }
 0x361   : > { %2080 = vperm.xlu1 %3212, %v2492_v5  }
 0x362   : > { %1939 = vrot.lane.b32.xlu0 %v3699_v56, %s3233_s12 }
 0x366   : > { %2260 = vperm.xlu0 %2821, %v2257_v15  }
 0x38b   : > { %v3054_v32 = vpop.permute.xlu1 %3053 }
 0x38c   : > { %v3055_v9 = vunpack.i.l.bf16 %v3054_v32  ;;  %v3056_v22 = vunpack.i.h.bf16 %v3054_v32 }
 0x38f   : > { %v3059_v37 = vpop.permute.xlu1 %3058 }
 0x390   : > { %v3089_v3 = vpop.permute.xlu0 %3088  ;;  %v3061_v7 = vunpack.i.h.bf16 %v3059_v37  ;;  %v3060_v13 = vunpack.i.l.bf16 %v3059_v37  ;;  %v1617_v37 = vsel %vm425_vm3, %v3010_v57, %v3050_v6 }
 0x391   : > { %v3091_v38 = vunpack.i.h.bf16 %v3089_v3  ;;  %v3090_v0 = vunpack.i.l.bf16 %v3089_v3 }
 0x393   : > { %v3786_v39 = vpop.permute.xlu1 %3063  ;;  %v1499_v2 = vsel %vm383_vm1, %v3090_v0, %v3091_v38 }
 0x394   : > { %v3094_v43 = vpop.permute.xlu0 %3093  ;;  %v2661_v44 = vpack.c.bf16 %v1557_v40, %v1499_v2  ;;  %v1618_v40 = vsel %vm425_vm3, %v3011_v51, %v3051_v20 }
 0x395   : > { %v3095_v52 = vunpack.i.l.bf16 %v3094_v43  ;;  %v3096_v63 = vunpack.i.h.bf16 %v3094_v43 }
 0x396   : > { %2662 = vmatprep.subr.bf16.mxu1 %v2661_v44  ;;  %v1623_v44 = vsel %vm425_vm3, %v3005_v49, %v3045_v62 }
 0x397   : > { %v3792_v45 = vpop.permute.xlu1 %3068  ;;  %v1564_v5 = vsel %vm404_vm2, %v3055_v9, %v3095_v52  ;;  %v1565_v1 = vsel %vm404_vm2, %v3056_v22, %v3096_v63  ;;  %v1561_v3 = vsel %vm404_vm2, %v3095_v52, %v3060_v13  ;;  %v1620_v52 = vsel %vm425_vm3, %v3045_v62, %v3010_v57 }
 0x398   : > { %v3099_v50 = vpop.permute.xlu0 %3098  ;;  %v2613_v43 = vpack.c.bf16 %v1565_v1, %v1564_v5  ;;  %v3016_v57 = vunpack.i.h.bf16 %v3776_v30 }
 0x399   : > { %v3101_v53 = vunpack.i.h.bf16 %v3099_v50  ;;  %v3100_v54 = vunpack.i.l.bf16 %v3099_v50 }
 0x39b   : > { %v3074_v19 = vpop.permute.xlu1 %3073  ;;  %v1558_v14 = vsel %vm404_vm2, %v3060_v13, %v3100_v54  ;;  %v1559_v15 = vsel %vm404_vm2, %v3061_v7, %v3101_v53  ;;  %v1567_v41 = vsel %vm404_vm2, %v3100_v54, %v3055_v9  ;;  %v1568_v42 = vsel %vm404_vm2, %v3101_v53, %v3056_v22 }
 0x39c   : > { %v3076_v17 = vunpack.i.h.bf16 %v3074_v19  ;;  %v3075_v24 = vunpack.i.l.bf16 %v3074_v19  ;;  %v3806_v21 = vpop.permute.xlu0 %3113  ;;  %v2665_v2 = vpack.c.bf16 %v1559_v15, %v1558_v14  ;;  %v1621_v53 = vsel %vm425_vm3, %v3046_v60, %v3011_v51 }
 0x39d   : > { %v2615_v54 = vpack.c.bf16 %v1568_v42, %v1567_v41  ;;  %v2669_v9 = vpack.c.bf16 %v1618_v40, %v1617_v37  ;;  %v1627_v13 = vsel %vm425_vm3, %v3051_v20, %v3006_v48  ;;  %v3021_v22 = vunpack.i.h.bf16 %v3669_v12 }
 0x39e   : > { %v1502_v26 = vsel %vm383_vm1, %v3076_v17, %v3090_v0  ;;  %v1508_v27 = vsel %vm383_vm1, %v3091_v38, %v3075_v24  ;;  %v1505_v29 = vsel %vm383_vm1, %v3075_v24, %v3076_v17  ;;  %v1562_v38 = vsel %vm404_vm2, %v3096_v63, %v3061_v7 }
 0x39f   : > { %v2663_v32 = vpack.c.bf16 %v1560_v8, %v1502_v26  ;;  %v2611_v4 = vpack.c.bf16 %v1566_v46, %v1508_v27  ;;  %v3824_v35 = vpop.permute.xlu1 %3078  ;;  %v2609_v36 = vpack.c.bf16 %v1563_v25, %v1505_v29  ;;  %v1624_v8 = vsel %vm425_vm3, %v3006_v48, %v3046_v60 }
 0x3a0   : > { %v3832_v0 = vpop.permute.xlu0 %3123  ;;  %v2667_v46 = vpack.c.bf16 %v1562_v38, %v1561_v3  ;;  %v1626_v7 = vsel %vm425_vm3, %v3050_v6, %v3005_v49  ;;  %v2617_v19 = vpack.c.bf16 %v1624_v8, %v1623_v44  ;;  %v3020_v17 = vunpack.i.l.bf16 %v3669_v12 }
 0x3a1   : > { %2610 = vmatprep.subr.bf16.mxu0 %v2609_v36  ;;  %2664 = vmatpush1.bf16.msra.mxu1 %v2663_v32  ;;  %v3015_v51 = vunpack.i.l.bf16 %v3776_v30  ;;  %v2671_v60 = vpack.c.bf16 %v1621_v53, %v1620_v52  ;;  %v2619_v24 = vpack.c.bf16 %v1627_v13, %v1626_v7  ;;  %v3031_v32 = vunpack.i.h.bf16 %v3671_v18 }
 0x3a2   : > { %2612 = vmatpush1.bf16.msra.mxu0 %v2611_v4  ;;  %2666 = vmatprep.subr.bf16.mxu1 %v2665_v2  ;;  %v1680_v14 = vsel %vm446_vm4, %v3016_v57, %v3020_v17  ;;  %v1677_v3 = vsel %vm446_vm4, %v3020_v17, %v3021_v22  ;;  %v3065_v38 = vunpack.i.l.bf16 %v3786_v39  ;;  %v3030_v42 = vunpack.i.l.bf16 %v3671_v18 }
 0x3a3   : > { %v3844_v50 = vpop.permute.xlu1 %3083  ;;  %2614 = vmatprep.subr.bf16.mxu0 %v2613_v43  ;;  %v1686_v12 = vsel %vm446_vm4, %v3021_v22, %v3015_v51  ;;  %v1683_v15 = vsel %vm446_vm4, %v3015_v51, %v3016_v57  ;;  %v3026_v43 = vunpack.i.h.bf16 %v3780_v31  ;;  %v3025_v44 = vunpack.i.l.bf16 %v3780_v31 }
 0x3a4   : > { %v3850_v63 = vpop.permute.xlu0 %3133  ;;  %v3066_v8 = vunpack.i.h.bf16 %v3786_v39  ;;  %v3890_v53 = vsel %vm475_vm5, %v3030_v42, %v3031_v32  ;;  %v3071_v39 = vunpack.i.h.bf16 %v3792_v45 }
 0x3a5   : > { %2668 = vmatpush1.bf16.msra.mxu1 %v2667_v46  ;;  %v1764_v17 = vsel %vm475_vm5, %v3026_v43, %v3030_v42  ;;  %v1770_v57 = vsel %vm475_vm5, %v3031_v32, %v3025_v44 }
 0x3a6   : > { %2616 = vmatpush1.bf16.msra.mxu0 %v2615_v54  ;;  %2670 = vmatprep.subr.bf16.mxu1 %v2669_v9  ;;  %v3070_v54 = vunpack.i.l.bf16 %v3792_v45 }
 0x3a7   : > { %v3104_v62 = vpop.permute.xlu1 %3103  ;;  %2618 = vmatprep.subr.bf16.mxu0 %v2617_v19  ;;  %v3898_v19 = vsel %vm475_vm5, %v3025_v44, %v3026_v43  ;;  %v3125_v43 = vunpack.i.l.bf16 %v3832_v0 }
 0x3a8   : > { %v3106_v49 = vunpack.i.h.bf16 %v3104_v62  ;;  %v3105_v6 = vunpack.i.l.bf16 %v3104_v62  ;;  %v3149_v25 = vpop.permute.xlu0 %3148 }
 0x3a9   : > { %v3151_v48 = vunpack.i.h.bf16 %v3149_v25  ;;  %v3150_v20 = vunpack.i.l.bf16 %v3149_v25  ;;  %2672 = vmatpush1.bf16.msra.mxu1 %v2671_v60 }
 0x3aa   : > { %2620 = vmatpush1.bf16.msra.mxu0 %v2619_v24  ;;  %v1625_v30 = vsel %vm425_vm3, %v3105_v6, %v3106_v49 }
 0x3ab   : > { %v1622_v5 = vsel %vm425_vm3, %v3106_v49, %v3150_v20  ;;  %v1628_v26 = vsel %vm425_vm3, %v3151_v48, %v3105_v6  ;;  %v3872_v27 = vpop.permute.xlu1 %3108  ;;  %v2621_v29 = vpack.c.bf16 %v1683_v15, %v1625_v30  ;;  %v1619_v1 = vsel %vm425_vm3, %v3150_v20, %v3151_v48 }
 0x3ac   : > { %v2623_v4 = vpack.c.bf16 %v1686_v12, %v1628_v26  ;;  %v2675_v36 = vpack.c.bf16 %v1680_v14, %v1622_v5  ;;  %v3154_v37 = vpop.permute.xlu0 %3153  ;;  %v2673_v41 = vpack.c.bf16 %v1677_v3, %v1619_v1  ;;  %v2635_v48 = vpack.c.bf16 %v3898_v19, %v3690_v47 }
 0x3ad   : > { %v3156_v2 = vunpack.i.h.bf16 %v3154_v37  ;;  %v3155_v40 = vunpack.i.l.bf16 %v3154_v37  ;;  %2622 = vmatprep.subr.bf16.mxu0 %v2621_v29  ;;  %v2633_v14 = vpack.c.bf16 %v1764_v17, %v3704_v58  ;;  %v2685_v12 = vpack.c.bf16 %v1770_v57, %v3699_v56 }
 0x3ae   : > { %2624 = vmatpush1.bf16.msra.mxu0 %v2623_v4  ;;  %2674 = vmatprep.subr.bf16.mxu1 %v2673_v41  ;;  %v2687_v26 = vpack.c.bf16 %v3890_v53, %v3695_v55  ;;  %v3116_v29 = vunpack.i.h.bf16 %v3806_v21  ;;  %v3115_v1 = vunpack.i.l.bf16 %v3806_v21  ;;  %v3111_v32 = vunpack.i.h.bf16 %v3872_v27 }
 0x3af   : > { %v3884_v46 = vpop.permute.xlu1 %3118  ;;  %v1684_v52 = vsel %vm446_vm4, %v3065_v38, %v3155_v40  ;;  %2676 = vmatpush1.bf16.msra.mxu1 %v2675_v36  ;;  %v1685_v31 = vsel %vm446_vm4, %v3066_v8, %v3156_v2  ;;  %v1681_v22 = vsel %vm446_vm4, %v3155_v40, %v3070_v54  ;;  %v1682_v51 = vsel %vm446_vm4, %v3156_v2, %v3071_v39 }
 0x3b0   : > { %v3159_v18 = vpop.permute.xlu0 %3158  ;;  %v2625_v13 = vpack.c.bf16 %v1685_v31, %v1684_v52  ;;  %v2679_v30 = vpack.c.bf16 %v1682_v51, %v1681_v22  ;;  %v3110_v4 = vunpack.i.l.bf16 %v3872_v27  ;;  %v3081_v37 = vunpack.i.h.bf16 %v3824_v35 }
 0x3b1   : > { %v3161_v9 = vunpack.i.h.bf16 %v3159_v18  ;;  %v3160_v7 = vunpack.i.l.bf16 %v3159_v18  ;;  %v3080_v3 = vunpack.i.l.bf16 %v3824_v35  ;;  %v3085_v2 = vunpack.i.l.bf16 %v3844_v50 }
 0x3b2   : > { %2626 = vmatprep.subr.bf16.mxu0 %v2625_v13  ;;  %v3126_v21 = vunpack.i.h.bf16 %v3832_v0  ;;  %v3121_v41 = vunpack.i.h.bf16 %v3884_v46  ;;  %v3120_v44 = vunpack.i.l.bf16 %v3884_v46  ;;  %v3135_v52 = vunpack.i.l.bf16 %v3850_v63 }
 0x3b3   : > { %v1687_v45 = vsel %vm446_vm4, %v3160_v7, %v3065_v38  ;;  %v1688_v60 = vsel %vm446_vm4, %v3161_v9, %v3066_v8  ;;  %v3912_v62 = vpop.permute.xlu1 %3128  ;;  %v1678_v24 = vsel %vm446_vm4, %v3070_v54, %v3160_v7  ;;  %v1679_v25 = vsel %vm446_vm4, %v3071_v39, %v3161_v9 }
 0x3b4   : > { %v2627_v49 = vpack.c.bf16 %v1688_v60, %v1687_v45  ;;  %v3164_v6 = vpop.permute.xlu0 %3163  ;;  %v2677_v20 = vpack.c.bf16 %v1679_v25, %v1678_v24  ;;  %v3086_v38 = vunpack.i.h.bf16 %v3844_v50  ;;  %v3136_v8 = vunpack.i.h.bf16 %v3850_v63 }
 0x3b5   : > { %v3166_v15 = vunpack.i.h.bf16 %v3164_v6  ;;  %v3165_v5 = vunpack.i.l.bf16 %v3164_v6  ;;  %v3949_v53 = vsel %vm496_vm6, %v3111_v32, %v3116_v29  ;;  %v3953_v0 = vsel %vm496_vm6, %v3110_v4, %v3115_v1 }
 0x3b6   : > { %2628 = vmatpush1.bf16.msra.mxu0 %v2627_v49  ;;  %2678 = vmatprep.subr.bf16.mxu1 %v2677_v20  ;;  %v1830_v31 = vsel %vm496_vm6, %v3125_v43, %v3110_v4  ;;  %v1831_v39 = vsel %vm496_vm6, %v3126_v21, %v3111_v32  ;;  %v3970_v9 = vsel %vm496_vm6, %v3121_v41, %v3126_v21  ;;  %v3131_v17 = vunpack.i.h.bf16 %v3912_v62 }
 0x3b7   : > { %v3928_v36 = vpop.permute.xlu1 %3138  ;;  %2630 = vmatprep.subr.bf16.mxu0 %v3575_v23  ;;  %2680 = vmatpush1.bf16.msra.mxu1 %v2679_v30  ;;  %v1765_v35 = vsel %vm475_vm5, %v3165_v5, %v3085_v2  ;;  %v1766_v50 = vsel %vm475_vm5, %v3166_v15, %v3086_v38  ;;  %v1768_v7 = vsel %vm475_vm5, %v3080_v3, %v3165_v5  ;;  %v3130_v45 = vunpack.i.l.bf16 %v3912_v62 }
 0x3b8   : > { %v3169_v40 = vpop.permute.xlu0 %3168  ;;  %2682 = vmatprep.subr.bf16.mxu1 %v3579_v28  ;;  %v1769_v13 = vsel %vm475_vm5, %v3081_v37, %v3166_v15  ;;  %v2637_v19 = vpack.c.bf16 %v1766_v50, %v1765_v35  ;;  %v1821_v22 = vsel %vm496_vm6, %v3120_v44, %v3125_v43  ;;  %v1824_v57 = vsel %vm496_vm6, %v3115_v1, %v3120_v44 }
 0x3b9   : > { %v3171_v27 = vunpack.i.h.bf16 %v3169_v40  ;;  %v3170_v42 = vunpack.i.l.bf16 %v3169_v40  ;;  %v1825_v51 = vsel %vm496_vm6, %v3116_v29, %v3121_v41  ;;  %v3990_v25 = vsel %vm517_vm7, %v3135_v52, %v3136_v8 }
 0x3ba   : > { %2632 = vmatpush1.bf16.msra.mxu0 %v3589_v33  ;;  %v2643_v62 = vpack.c.bf16 %v3949_v53, %v3953_v0  ;;  %v2641_v5 = vpack.c.bf16 %v1825_v51, %v1824_v57  ;;  %v2695_v29 = vpack.c.bf16 %v3970_v9, %v1821_v22  ;;  %v1887_v1 = vsel %vm517_vm7, %v3130_v45, %v3131_v17 }
 0x3bb   : > { %v3955_v46 = vpop.permute.xlu1 %3143  ;;  %2634 = vmatprep.subr.bf16.mxu0 %v2633_v14  ;;  %2684 = vmatpush1.bf16.msra.mxu1 %v3595_v34  ;;  %v1771_v18 = vsel %vm475_vm5, %v3170_v42, %v3080_v3  ;;  %v1772_v63 = vsel %vm475_vm5, %v3171_v27, %v3081_v37  ;;  %v1762_v60 = vsel %vm475_vm5, %v3085_v2, %v3170_v42  ;;  %v3141_v40 = vunpack.i.h.bf16 %v3928_v36 }
 0x3bc   : > { %v3958_v54 = vpop.permute.xlu0 %3183  ;;  %2686 = vmatprep.subr.bf16.mxu1 %v2685_v12  ;;  %v1763_v24 = vsel %vm475_vm5, %v3086_v38, %v3171_v27  ;;  %v2689_v6 = vpack.c.bf16 %v1772_v63, %v1771_v18  ;;  %v2693_v4 = vpack.c.bf16 %v1831_v39, %v1830_v31  ;;  %v1884_v38 = vsel %vm517_vm7, %v3131_v17, %v3135_v52 }
 0x3bd   : > { %v2691_v32 = vpack.c.bf16 %v1763_v24, %v1762_v60  ;;  %v1890_v2 = vsel %vm517_vm7, %v3136_v8, %v3130_v45  ;;  %v3140_v21 = vunpack.i.l.bf16 %v3928_v36  ;;  %v3146_v43 = vunpack.i.h.bf16 %v3955_v46 }
 0x3be   : > { %2636 = vmatpush1.bf16.msra.mxu0 %v2635_v48  ;;  %v2639_v48 = vpack.c.bf16 %v1769_v13, %v1768_v7  ;;  %v3145_v44 = vunpack.i.l.bf16 %v3955_v46  ;;  %v3186_v52 = vunpack.i.h.bf16 %v3958_v54  ;;  %v3185_v8 = vunpack.i.l.bf16 %v3958_v54 }
 0x3bf   : > { %v3174_v49 = vpop.permute.xlu1 %3173  ;;  %2638 = vmatprep.subr.bf16.mxu0 %v2637_v19  ;;  %2688 = vmatpush1.bf16.msra.mxu1 %v2687_v26 }
 0x3c0   : > { %v3176_v20 = vunpack.i.h.bf16 %v3174_v49  ;;  %v3175_v14 = vunpack.i.l.bf16 %v3174_v49  ;;  %v3194_v12 = vpop.permute.xlu0 %3193  ;;  %2690 = vmatprep.subr.bf16.mxu1 %v2689_v6 }
 0x3c1   : > { %v3196_v30 = vunpack.i.h.bf16 %v3194_v12  ;;  %v3195_v15 = vunpack.i.l.bf16 %v3194_v12 }
 0x3c2   : > { %2640 = vmatpush1.bf16.msra.mxu0 %v2639_v48  ;;  %v1829_v37 = vsel %vm496_vm6, %v3175_v14, %v3176_v20 }
 0x3c3   : > { %v3999_v26 = vpop.permute.xlu1 %3178  ;;  %2642 = vmatprep.subr.bf16.mxu0 %v2641_v5  ;;  %v1826_v3 = vsel %vm496_vm6, %v3176_v20, %v3195_v15  ;;  %2692 = vmatpush1.bf16.msra.mxu1 %v2691_v32  ;;  %v1832_v42 = vsel %vm496_vm6, %v3196_v30, %v3175_v14  ;;  %v2647_v53 = vpack.c.bf16 %v1887_v1, %v1829_v37 }
 0x3c4   : > { %v3199_v41 = vpop.permute.xlu0 %3198  ;;  %v2645_v27 = vpack.c.bf16 %v1884_v38, %v1826_v3  ;;  %2694 = vmatprep.subr.bf16.mxu1 %v2693_v4  ;;  %v1823_v36 = vsel %vm496_vm6, %v3195_v15, %v3196_v30  ;;  %v3181_v0 = vunpack.i.h.bf16 %v3999_v26  ;;  %v3180_v18 = vunpack.i.l.bf16 %v3999_v26 }
 0x3c5   : > { %v3201_v35 = vunpack.i.h.bf16 %v3199_v41  ;;  %v3200_v50 = vunpack.i.l.bf16 %v3199_v41  ;;  %v2697_v31 = vpack.c.bf16 %v1890_v2, %v1832_v42  ;;  %v2699_v51 = vpack.c.bf16 %v3990_v25, %v1823_v36  ;;  %v2490_v42 = vld [vmem:[%s4086_s1 + $0x20] sm:$0xff] }
 0x3c6   : > { %2644 = vmatpush1.bf16.msra.mxu0 %v2643_v62  ;;  %v1948_v20 = vsel %vm538_vm8, %v3181_v0, %v3186_v52  ;;  %v1947_v15 = vsel %vm538_vm8, %v3180_v18, %v3185_v8 }
 0x3c7   : > { %v3189_v63 = vpop.permute.xlu1 %3188  ;;  %2646 = vmatprep.subr.bf16.mxu0 %v2645_v27  ;;  %v1885_v46 = vsel %vm517_vm7, %v3200_v50, %v3145_v44  ;;  %v1888_v39 = vsel %vm517_vm7, %v3140_v21, %v3200_v50  ;;  %2696 = vmatpush1.bf16.msra.mxu1 %v2695_v29  ;;  %v1886_v13 = vsel %vm517_vm7, %v3201_v35, %v3146_v43  ;;  %v3242_v50 = vmov 0.0  }
 0x3c8   : > { %v3191_v9 = vunpack.i.h.bf16 %v3189_v63  ;;  %v3190_v54 = vunpack.i.l.bf16 %v3189_v63  ;;  %v3204_v7 = vpop.permute.xlu0 %3203  ;;  %v1889_v19 = vsel %vm517_vm7, %v3141_v40, %v3201_v35  ;;  %2698 = vmatprep.subr.bf16.mxu1 %v2697_v31  ;;  %v2649_v57 = vpack.c.bf16 %v1886_v13, %v1885_v46 }
 0x3c9   : > { %v3206_v22 = vunpack.i.h.bf16 %v3204_v7  ;;  %v3205_v17 = vunpack.i.l.bf16 %v3204_v7  ;;  %v2651_v14 = vpack.c.bf16 %v1889_v19, %v1888_v39  ;;  %v2655_v38 = vpack.c.bf16 %v1948_v20, %v1947_v15 }
 0x3ca   : > { %2648 = vmatpush1.bf16.msra.mxu0 %v2647_v53  ;;  %v1944_v45 = vsel %vm538_vm8, %v3185_v8, %v3190_v54  ;;  %v1945_v60 = vsel %vm538_vm8, %v3186_v52, %v3191_v9 }
 0x3cb   : > { %v1882_v24 = vsel %vm517_vm7, %v3145_v44, %v3205_v17  ;;  %v1883_v49 = vsel %vm517_vm7, %v3146_v43, %v3206_v22  ;;  %v1922_v6 = vpop.permute.xlu1 %1921  ;;  %2650 = vmatprep.subr.bf16.mxu0 %v2649_v57  ;;  %v1891_v48 = vsel %vm517_vm7, %v3205_v17, %v3140_v21  ;;  %v1892_v25 = vsel %vm517_vm7, %v3206_v22, %v3141_v40 }
 0x3cc   : > { %v2703_v12 = vpack.c.bf16 %v1883_v49, %v1882_v24  ;;  %2700 = vmatpush1.bf16.msra.mxu1 %v2699_v51  ;;  %v3209_v62 = vpop.permute.xlu0 %3208  ;;  %v2701_v30 = vpack.c.bf16 %v1892_v25, %v1891_v48  ;;  %v2653_v1 = vpack.c.bf16 %v1945_v60, %v1944_v45 }
 0x3cd   : > { %v3211_v5 = vunpack.i.h.bf16 %v3209_v62  ;;  %v3210_v29 = vunpack.i.l.bf16 %v3209_v62 }
 0x3ce   : > { %2652 = vmatpush1.bf16.msra.mxu0 %v2651_v14  ;;  %2702 = vmatprep.subr.bf16.mxu1 %v2701_v30 }
 0x3cf   : > { %v1941_v32 = vsel %vm538_vm8, %v3190_v54, %v3210_v29  ;;  %v1942_v4 = vsel %vm538_vm8, %v3191_v9, %v3211_v5  ;;  %v1934_v37 = vpop.permute.xlu1 %1933  ;;  %2654 = vmatprep.subr.bf16.mxu0 %v2653_v1  ;;  %v1950_v26 = vsel %vm538_vm8, %v3210_v29, %v3180_v18  ;;  %v1951_v3 = vsel %vm538_vm8, %v3211_v5, %v3181_v0 }
 0x3d0   : > { %v2707_v2 = vpack.c.bf16 %v1942_v4, %v1941_v32  ;;  %2704 = vmatpush1.bf16.msra.mxu1 %v2703_v12  ;;  %v1928_v40 = vpop.permute.xlu0 %1927  ;;  %v2705_v21 = vpack.c.bf16 %v1951_v3, %v1950_v26 }
 0x3d1   : > { %v1946_v41 = vsel %vm538_vm8, %v1928_v40, %v1934_v37  ;;  %v1949_v43 = vsel %vm538_vm8, %v1922_v6, %v1928_v40 }
 0x3d2   : > { %2656 = vmatpush1.bf16.msra.mxu0 %v2655_v38  ;;  %2706 = vmatprep.subr.bf16.mxu1 %v2705_v21 }
 0x3d3   : > { %2138 = vmatprep.subr.mxu0 %v1946_v41 }
 0x3d4   : > { %2708 = vmatpush1.bf16.msra.mxu1 %v2707_v2  ;;  %v1940_v27 = vpop.permute.xlu0 %1939 }
 0x3d5   : > { %v1943_v44 = vsel %vm538_vm8, %v1934_v37, %v1940_v27  ;;  %v1952_v35 = vsel %vm538_vm8, %v1940_v27, %v1922_v6 }
 0x3d6   : > { %2139 = vmatpush1.msra.mxu0 %v1949_v43  ;;  %2209 = vmatprep.subr.mxu1 %v1952_v35 }
 0x3d7   : > { %2151 = vmatmul.mubr.f32.vlgmr.msra.gmra.mrb[4].mxu0 %v2490_v42  ;;  %2710 = vmatprep.subr.bf16.mxu0 %v3575_v23 }
 0x3d8   : > { %2210 = vmatpush1.msra.mxu1 %v1943_v44  ;;  %2712 = vmatpush1.bf16.msra.mxu0 %v3589_v33 }
 0x3d9   : > { %2222 = vmatmul.mubr.f32.vlgmr.msra.gmra.mrb[4].mxu1 %v2490_v42  ;;  %2718 = vmatprep.subr.bf16.mxu1 %v3579_v28 }
 0x3da   : > { %2720 = vmatpush1.bf16.msra.mxu1 %v3595_v34  ;;  %2331 = vmatprep.mubr.f32.mxu0 %v3242_v50 }
 0x3db   : > { %2402 = vmatprep.mubr.f32.mxu1 %v3242_v50 }
 0x3e0   : > { %v2081_v52 = vpop.permute.xlu1 %2080 }
 0x4aa   : > { %v2152_v8 = vpop.f32.mrb[4].mxu0 }
 0x4ab   : > { %v2153_v10 = vadd.f32 %v2152_v8, %v2081_v52  ;;  %v2154_v53 = vpop.f32.mrb[5].mxu0 }
 0x4ac   : > { %v2155_v36 = vadd.f32 %v2154_v53, %v2081_v52  ;;  %v2223_v0 = vpop.f32.mrb[4].mxu1 }
 0x4ad   : > { %v2228_v18 = vmax.f32 %v2153_v10, 0.0  ;;  %v2224_v63 = vadd.f32 %v2223_v0, %v2081_v52  ;;  %v2225_v23 = vpop.f32.mrb[5].mxu1 }
 0x4ae   : > { %v2229_v31 = vmax.f32 %v2155_v36, 0.0  ;;  %v2226_v46 = vadd.f32 %v2225_v23, %v2081_v52 }
 0x4af   : > { %v2232_v33 = vmul.f32 %v2228_v18, %v3444_v59  ;;  %v2230_v39 = vmax.f32 %v2224_v63, 0.0  ;;  %v2240_v59 = vld [vmem:[%s4088_s3] sm:$0xf] }
 0x4b0   : > { %v2233_v28 = vmul.f32 %v2229_v31, %v3448_v11  ;;  %v2231_v34 = vmax.f32 %v2226_v46, 0.0 }
 0x4b1   : > { %v2234_v9 = vmul.f32 %v2230_v39, %v3446_v61  ;;  %v2715_v13 = vpack.c.bf16 %v2232_v33, %v3690_v47  ;;  %v2261_v61 = vpop.permute.xlu0 %2260 }
 0x4b2   : > { %v2235_v54 = vmul.f32 %v2231_v34, %v3456_v16  ;;  %v2713_v7 = vpack.c.bf16 %v2233_v28, %v3704_v58 }
 0x4b3   : > { %v2723_v22 = vpack.c.bf16 %v2234_v9, %v3695_v55 }
 0x4b4   : > { %2714 = vmatprep.subr.bf16.mxu0 %v2713_v7  ;;  %v2721_v19 = vpack.c.bf16 %v2235_v54, %v3699_v56 }
 0x4b5   : > { %2716 = vmatpush1.bf16.msra.mxu0 %v2715_v13 }
 0x4b6   : > { %2722 = vmatprep.subr.bf16.mxu1 %v2721_v19 }
 0x4b7   : > { %2724 = vmatpush1.bf16.msra.mxu1 %v2723_v22 }
 0x4b8   : > { %2495 = vmatmul.mubr.msk.f32.vlgmr.msra.gmra.mrb[6].mxu0 %vm2263_vm0, %v2240_v59 }
 0x4ba   : > { %2496 = vmatmul.mubr.msk.f32.vlgmr.msra.gmra.mrb[6].mxu1 %vm2263_vm0, %v2240_v59 }
 0x58b   : > { %v2333_v11 = vpop.f32.mrb[6].mxu0 }
 0x58c   : > { %v2334_v16 = vadd.f32 %v2333_v11, %v2261_v61  ;;  %v2335_v47 = vpop.f32.mrb[7].mxu0 }
 0x58d   : > { %v2336_v58 = vadd.f32 %v2335_v47, %v2261_v61  ;;  %v2404_v17 = vpop.f32.mrb[6].mxu1 }
 0x58e   : > { %v2405_v55 = vadd.f32 %v2404_v17, %v2261_v61  ;;  %v2406_v56 = vpop.f32.mrb[7].mxu1 }
 0x58f   : > { %v2413_v57 = vcombine.low %v2334_v16, %v2336_v58  ;;  %v2407_v51 = vadd.f32 %v2406_v56, %v2261_v61 }
 0x591   : > { %2417 = vst [vmem:[%s251_s9] sm:$0xff] %v2413_v57  ;;  %v2414_v45 = vcombine.low %v2405_v55, %v2407_v51 }
 0x593   : > { %2418 = vst [vmem:[%s251_s9 + $0x8] sm:$0xff] %v2414_v45 }
 0x594 PF: > { %s16_s21 = sadd.s32 1, %s3223_s21  }
 0x595   : > { %p13_p4 = scmp.ge.s32.totalorder %s16_s21, 4  }
 0x597   :  { %15 = sbr.rel (!%p13_p4) target bundleno = 1 (0x1), region = 78 }

</bundles_post_ra>
